<compile_context>
chip_gen: v6e
topology: v6e:2x2x1
jax: 0.10.0
libtpu: 0.0.40
codegen_flags: <defaults>
</compile_context>

<pallas_src>
import functools
import math

import jax
import jax.numpy as jnp
from jax import lax
from jax.experimental import pallas as pl
from jax.experimental.pallas import tpu as pltpu

START_TAG = "<START>"
STOP_TAG = "<STOP>"
tag_to_idx = {"B": 0, "I": 1, "O": 2, START_TAG: 3, STOP_TAG: 4}
START_IDX = tag_to_idx[START_TAG]
STOP_IDX = tag_to_idx[STOP_TAG]


def _round8(n):
    return (n + 7) // 8 * 8


def _layout(V, H, T):
    """Row offsets of the single packed parameter buffer (width = 8*H lanes).

    Sections are 8-row aligned so the in-kernel static slices are tile-aligned.
      xtab : rows [xtab, xtab+2V+1)  fused projection table [emb@Wx_f | emb@Wx_b | b_x]
      whh  : rows [whh,  whh+2H)     recurrent weights, interleaved gate cols, 0.5-scaled
      hc   : row hc = h0, row hc+1 = c0 (first 2H lanes)
      w2t  : rows [w2t,  w2t+2H)     hidden2tag weights (first T lanes used)
      tr   : rows [tr,   tr+T)       transitions TRANSPOSED (transT[k,j] = trans[j,k]);
             row tr+T = hidden2tag bias (first T lanes)
    """
    H2 = 2 * H
    off = 0
    lay = {}
    lay["xtab"], off = off, off + _round8(2 * V + 1)
    lay["xtab_rows"] = _round8(2 * V + 1)
    lay["whh"], off = off, off + _round8(H2)
    lay["hc"], off = off, off + 8
    lay["w2t"], off = off, off + _round8(H2)
    lay["tr"], off = off, off + _round8(T + 1)
    lay["rows"] = off
    return lay


# -----------------------------------------------------------------------------
# Fused kernel: one-hot projection -> interleaved BiLSTM -> hidden2tag ->
# Viterbi DP -> backtrack.  Two inputs (token ids, packed params), one output row.
# -----------------------------------------------------------------------------
def _make_kernel(V, H, T):
    H2, H8 = 2 * H, 8 * H
    lay = _layout(V, H, T)
    K = lay["xtab_rows"]          # padded one-hot width (>= 2V+1)

    def kernel(ids_ref, p_ref, out_ref, xproj_scr, hcat_scr, feats_scr, bp_scr):
        S = ids_ref.shape[0]

        # ---- 1. fused embedding gather + input projections + bias: one matmul ------
        ids = ids_ref[:, 0:1]          # (S,1) original order
        ids_rev = ids_ref[:, 1:2]      # (S,1) time-reversed
        col = lax.broadcasted_iota(jnp.int32, (S, K), 1)
        oh = (jnp.where(col == ids, 1.0, 0.0)
              + jnp.where(col == ids_rev + V, 1.0, 0.0)
              + jnp.where(col == 2 * V, 1.0, 0.0))          # [onehot(id)|onehot(rev)|1]
        xtab = p_ref[lay["xtab"]:lay["xtab"] + K, :]         # (K, 8H), 0.5-scaled i/f/o cols
        xproj_scr[...] = jnp.dot(oh, xtab, preferred_element_type=jnp.float32)

        # ---- 2. interleaved fwd/bwd LSTM: one matmul + ONE tanh over all gates -----
        whh = p_ref[lay["whh"]:lay["whh"] + H2, :]           # (2H, 8H), 0.5-scaled i/f/o
        h0 = p_ref[lay["hc"]:lay["hc"] + 1, 0:H2]            # (1, 2H) [fwd|bwd]
        c0 = p_ref[lay["hc"] + 1:lay["hc"] + 2, 0:H2]
        lane8 = lax.broadcasted_iota(jnp.int32, (1, H8), 1)
        is_g = (lane8 >= 2 * H2) & (lane8 < 3 * H2)          # g-gate lanes
        g_scale = jnp.where(is_g, 1.0, 0.5)                  # sigmoid = 0.5*tanh(.5x)+0.5
        g_off = jnp.where(is_g, 0.0, 0.5)

        def rec_body(i, carry):
            h, c = carry                                     # (1,2H) each
            gates = (jnp.dot(h, whh, preferred_element_type=jnp.float32)
                     + xproj_scr[pl.ds(i, 1), :])            # (1, 8H), i/f/o pre-scaled
            act = jnp.tanh(gates) * g_scale + g_off          # single EUP tanh for 4 gates
            ig = act[:, 0:H2]
            fg = act[:, H2:2 * H2]
            gg = act[:, 2 * H2:3 * H2]
            og = act[:, 3 * H2:4 * H2]
            c_new = fg * c + ig * gg
            h_new = og * jnp.tanh(c_new)
            hcat_scr[pl.ds(i, 1), 0:H] = h_new[:, 0:H]             # fwd out at t = i
            hcat_scr[pl.ds(S - 1 - i, 1), H:H2] = h_new[:, H:H2]   # bwd out at t = S-1-i
            return (h_new, c_new)

        lax.fori_loop(0, S, rec_body, (h0, c0), unroll=True)

        # ---- 3. hidden2tag: (S,2H)@(2H,8H zero-padded) then slice T lanes ----------
        w2t = p_ref[lay["w2t"]:lay["w2t"] + H2, :]           # (2H, 8H), cols >= T are 0
        b2t = p_ref[lay["tr"] + T:lay["tr"] + T + 1, 0:T]    # (1, T)
        feats_scr[...] = (jnp.dot(hcat_scr[...], w2t,
                                  preferred_element_type=jnp.float32)[:, 0:T] + b2t)

        # ---- 4. Viterbi DP: sublane max/argmax lands directly in (1,T) row layout --
        transT = p_ref[lay["tr"]:lay["tr"] + T, 0:T]         # transT[k,j] = trans[j,k]
        sub_TT = lax.broadcasted_iota(jnp.int32, (T, T), 0)
        lane_TT = lax.broadcasted_iota(jnp.int32, (T, T), 1)
        eye_T = sub_TT == lane_TT
        sub_TT_f = sub_TT.astype(jnp.float32)
        lane_T = lax.broadcasted_iota(jnp.int32, (1, T), 1)
        sub_T1 = lax.broadcasted_iota(jnp.int32, (T, 1), 0)
        fv0 = jnp.where(sub_T1 == START_IDX, 0.0, -10000.0).astype(jnp.float32)  # (T,1)

        def vit_body(t, fv_col):                             # fv carried as (T,1) column
            # m[k,j] = fv[k] + trans[j,k] + feat[j]  (emission constant in k -> argmax ok)
            m = fv_col + transT + feats_scr[pl.ds(t, 1), :]
            mx = jnp.max(m, axis=0, keepdims=True)                        # (1,T)
            bp = jnp.min(jnp.where(m >= mx, sub_TT_f, float(T)),
                         axis=0, keepdims=True)                           # (1,T) first-idx
            bp_scr[pl.ds(t, 1), :] = bp.astype(jnp.int32)
            # row -> column for the next step via a masked lane reduce (no transpose op)
            return jnp.max(jnp.where(eye_T, mx, -1e30), axis=1, keepdims=True)

        fv_col = lax.fori_loop(0, S, vit_body, fv0, unroll=True)

        terminal = fv_col + transT[:, STOP_IDX:STOP_IDX + 1]              # (T,1)
        maxv = jnp.max(terminal, axis=0, keepdims=True)                   # (1,1)
        best_last = jnp.min(jnp.where(terminal >= maxv, sub_T1.astype(jnp.float32),
                                      float(T)),
                            axis=0, keepdims=True).astype(jnp.int32)      # (1,1)

        # ---- 5. backtrack in-kernel -------------------------------------------------
        lane_S = lax.broadcasted_iota(jnp.int32, (1, S), 1)
        path0 = jnp.where(lane_S == S - 1, best_last, jnp.zeros((1, S), jnp.int32))

        def bt_body(j, carry):
            path_row, cur = carry
            t = S - 2 - j
            bp_row = bp_scr[pl.ds(t + 1, 1), :]                           # (1,T)
            prev = jnp.sum(jnp.where(lane_T == cur, bp_row, 0),
                           axis=1, keepdims=True)                         # = bp[t+1][cur]
            path_row = jnp.where(lane_S == t, prev, path_row)
            return (path_row, prev)

        path_row, _ = lax.fori_loop(0, S - 1, bt_body, (path0, best_last), unroll=True)
        # TODO(synk): the reference's debug `assert start == <START>` after the backtrack
        # is not reproduced in-kernel (it only sanity-checks and does not change outputs).

        # ---- 6. single lane-dense output row: lanes 0..S-1 = path, lane S = score ---
        out_ref[...] = jnp.zeros_like(out_ref)
        out_ref[0:1, 0:S] = path_row.astype(jnp.float32)
        out_ref[0:1, S:S + 1] = maxv

    return kernel


# -----------------------------------------------------------------------------
# Wrapper: single pallas_call, 2 inputs, 1 output, no grid.
# -----------------------------------------------------------------------------
def bilstm_crf_forward(sentence, ptab, *, V, H, T):
    S = sentence.shape[0]
    ids = sentence.astype(jnp.int32).reshape(S, 1)
    ids2 = jnp.concatenate([ids, ids[::-1]], axis=1)          # (S,2): [ids | reversed ids]
    out_w = max(128, ((S + 1 + 127) // 128) * 128)

    vmem = pl.BlockSpec(memory_space=pltpu.MemorySpace.VMEM)
    out = pl.pallas_call(
        _make_kernel(V, H, T),
        out_shape=jax.ShapeDtypeStruct((1, out_w), jnp.float32),
        in_specs=[vmem, vmem],
        out_specs=vmem,
        scratch_shapes=[pltpu.VMEM((S, 8 * H), jnp.float32),   # xproj    (S, 8H)
                        pltpu.VMEM((S, 2 * H), jnp.float32),   # lstm out (S, 2H)
                        pltpu.VMEM((S, T), jnp.float32),       # feats
                        pltpu.VMEM((S, T), jnp.int32)],        # backpointers
    )(ids2, ptab)
    score = out[0, S]
    path = out[0, :S].astype(jnp.int32)
    return score, path


# -----------------------------------------------------------------------------
# Deterministic parameter init (shapes from BiLSTM_CRF.__init__, PyTorch layout)
# -----------------------------------------------------------------------------
def init_params(key, vocab_size, embedding_dim, hidden_dim, tagset_size):
    H = hidden_dim // 2
    ks = jax.random.split(key, 16)
    std = 1.0 / math.sqrt(H)
    std2 = 1.0 / math.sqrt(hidden_dim)
    u = lambda k, shape, s: jax.random.uniform(k, shape, jnp.float32, -s, s)

    params = dict(
        embedding=jax.random.normal(ks[0], (vocab_size, embedding_dim), jnp.float32),
        # LSTM weights stored transposed ((in,4H)/(H,4H)), PyTorch gate order [i,f,g,o]
        wih_f=u(ks[1], (embedding_dim, 4 * H), std),
        whh_f=u(ks[2], (H, 4 * H), std),
        b_f=u(ks[3], (1, 4 * H), std) + u(ks[4], (1, 4 * H), std),   # b_ih + b_hh
        wih_b=u(ks[5], (embedding_dim, 4 * H), std),
        whh_b=u(ks[6], (H, 4 * H), std),
        b_b=u(ks[7], (1, 4 * H), std) + u(ks[8], (1, 4 * H), std),
        # deterministic stand-in for init_hidden()'s torch.randn; row 0=fwd, row 1=bwd
        h0=jax.random.normal(ks[9], (2, H), jnp.float32),
        c0=jax.random.normal(ks[10], (2, H), jnp.float32),
        w2t=u(ks[11], (hidden_dim, tagset_size), std2),
        b2t=u(ks[12], (1, tagset_size), std2),
    )
    trans = jax.random.normal(ks[13], (tagset_size, tagset_size), jnp.float32)
    trans = trans.at[START_IDX, :].set(-1000.0)
    trans = trans.at[:, STOP_IDX].set(-1000.0)
    params["transitions"] = trans
    return params


def pack_params(p):
    """One-time layout transform into the kernel's single packed parameter buffer.

    Gate column order of all 8H-wide weights: [i_f i_b f_f f_b g_f g_b o_f o_b].
    The i/f/o gate columns (of the projection table, bias and whh) are pre-scaled by
    0.5 so the kernel can compute all four gates with a single tanh
    (sigmoid(x) = 0.5*tanh(0.5*x) + 0.5).  Transitions are stored transposed.
    """
    E, H4 = p["wih_f"].shape
    H = H4 // 4
    H2, H8 = 2 * H, 8 * H
    V = p["embedding"].shape[0]
    T = p["transitions"].shape[0]

    def interleave_x(w, d):      # (in,4H) -> (in,8H), placed at direction d
        out = jnp.zeros((w.shape[0], 4, 2, H), jnp.float32)
        out = out.at[:, :, d, :].set(w.reshape(w.shape[0], 4, H))
        return out.reshape(w.shape[0], H8)

    def interleave_h(w, d):      # (H,4H) -> (2H,8H)
        out = jnp.zeros((H2, 4, 2, H), jnp.float32)
        out = out.at[d * H:(d + 1) * H, :, d, :].set(w.reshape(H, 4, H))
        return out.reshape(H2, H8)

    def interleave_b(b, d):      # (1,4H) -> (1,8H)
        out = jnp.zeros((1, 4, 2, H), jnp.float32)
        out = out.at[:, :, d, :].set(b.reshape(1, 4, H))
        return out.reshape(1, H8)

    wx_f = interleave_x(p["wih_f"], 0)
    wx_b = interleave_x(p["wih_b"], 1)
    whh = interleave_h(p["whh_f"], 0) + interleave_h(p["whh_b"], 1)
    b_x = interleave_b(p["b_f"], 0) + interleave_b(p["b_b"], 1)

    lane = jnp.arange(H8)
    is_g = (lane >= 2 * H2) & (lane < 3 * H2)
    gate_scale = jnp.where(is_g, 1.0, 0.5).astype(jnp.float32)[None, :]   # (1,8H)

    # Fused embedding+projection table: rows [0,V)=emb@wx_f, [V,2V)=emb@wx_b, row 2V=bias
    xtab = jnp.concatenate([p["embedding"] @ wx_f, p["embedding"] @ wx_b, b_x], axis=0)
    xtab = xtab * gate_scale
    whh = whh * gate_scale

    lay = _layout(V, H, T)
    ptab = jnp.zeros((lay["rows"], H8), jnp.float32)
    ptab = ptab.at[lay["xtab"]:lay["xtab"] + 2 * V + 1, :].set(xtab)
    ptab = ptab.at[lay["whh"]:lay["whh"] + H2, :].set(whh)
    ptab = ptab.at[lay["hc"], :H2].set(p["h0"].reshape(H2))
    ptab = ptab.at[lay["hc"] + 1, :H2].set(p["c0"].reshape(H2))
    ptab = ptab.at[lay["w2t"]:lay["w2t"] + H2, :T].set(p["w2t"])
    ptab = ptab.at[lay["tr"]:lay["tr"] + T, :T].set(p["transitions"].T)
    ptab = ptab.at[lay["tr"] + T, :T].set(p["b2t"].reshape(T))
    return ptab


if __name__ == "__main__":
    vocab_size, embedding_dim, hidden_dim = 20, 16, 32
    seq_len = 8
    tagset_size = len(tag_to_idx)
    H = hidden_dim // 2

    key = jax.random.PRNGKey(0)
    k_sent, k_params = jax.random.split(key)
    sentence = jax.random.randint(k_sent, (seq_len,), 0, vocab_size, dtype=jnp.int32)
    raw_params = init_params(k_params, vocab_size, embedding_dim, hidden_dim, tagset_size)
    ptab = pack_params(raw_params)   # one-time weight-layout transform

    fwd = jax.jit(functools.partial(bilstm_crf_forward, V=vocab_size, H=H, T=tagset_size))
    score, tag_seq = fwd(sentence, ptab)
    jax.block_until_ready((score, tag_seq))
    print("KERNEL_OK")
</pallas_src>

<mosaic_0001>
module attributes {stable_mosaic.version = 11 : i64} {
  func.func @kernel(%arg0: memref<8x2xi32, #tpu.memory_space<vmem>>, %arg1: memref<128x128xf32, #tpu.memory_space<vmem>>, %arg2: memref<1x128xf32, #tpu.memory_space<vmem>>, %arg3: memref<8x128xf32, #tpu.memory_space<vmem>>, %arg4: memref<8x32xf32, #tpu.memory_space<vmem>>, %arg5: memref<8x5xf32, #tpu.memory_space<vmem>>, %arg6: memref<8x5xi32, #tpu.memory_space<vmem>>) attributes {dimension_semantics = [], scalar_prefetch = 0 : i64, scratch_operands = 4 : i64, tpu.core_type = #tpu.core_type<tc>} {
    %c0 = arith.constant 0 : index
    %c0_0 = arith.constant 0 : index
    %0 = vector.load %arg0[%c0, %c0_0] : memref<8x2xi32, #tpu.memory_space<vmem>>, vector<8x1xi32>
    %c0_1 = arith.constant 0 : index
    %c1 = arith.constant 1 : index
    %1 = vector.load %arg0[%c0_1, %c1] : memref<8x2xi32, #tpu.memory_space<vmem>>, vector<8x1xi32>
    %2 = tpu.iota {dimensions = array<i32: 1>} : vector<8x48xi32>
    %3 = vector.broadcast %0 : vector<8x1xi32> to vector<8x48xi32>
    %4 = arith.cmpi eq, %2, %3 : vector<8x48xi32>
    %cst = arith.constant 1.000000e+00 : f32
    %cst_2 = arith.constant 0.000000e+00 : f32
    %5 = vector.broadcast %cst : f32 to vector<8x48xf32>
    %6 = vector.broadcast %cst_2 : f32 to vector<8x48xf32>
    %7 = arith.select %4, %5, %6 : vector<8x48xi1>, vector<8x48xf32>
    %c20_i32 = arith.constant 20 : i32
    %8 = vector.broadcast %c20_i32 : i32 to vector<8x1xi32>
    %9 = arith.addi %1, %8 : vector<8x1xi32>
    %10 = vector.broadcast %9 : vector<8x1xi32> to vector<8x48xi32>
    %11 = arith.cmpi eq, %2, %10 : vector<8x48xi32>
    %cst_3 = arith.constant 1.000000e+00 : f32
    %cst_4 = arith.constant 0.000000e+00 : f32
    %12 = vector.broadcast %cst_3 : f32 to vector<8x48xf32>
    %13 = vector.broadcast %cst_4 : f32 to vector<8x48xf32>
    %14 = arith.select %11, %12, %13 : vector<8x48xi1>, vector<8x48xf32>
    %15 = arith.addf %7, %14 : vector<8x48xf32>
    %c40_i32 = arith.constant 40 : i32
    %16 = vector.broadcast %c40_i32 : i32 to vector<8x48xi32>
    %17 = arith.cmpi eq, %2, %16 : vector<8x48xi32>
    %cst_5 = arith.constant 1.000000e+00 : f32
    %cst_6 = arith.constant 0.000000e+00 : f32
    %18 = vector.broadcast %cst_5 : f32 to vector<8x48xf32>
    %19 = vector.broadcast %cst_6 : f32 to vector<8x48xf32>
    %20 = arith.select %17, %18, %19 : vector<8x48xi1>, vector<8x48xf32>
    %21 = arith.addf %15, %20 : vector<8x48xf32>
    %c0_7 = arith.constant 0 : index
    %c0_8 = arith.constant 0 : index
    %22 = vector.load %arg1[%c0_7, %c0_8] : memref<128x128xf32, #tpu.memory_space<vmem>>, vector<48x128xf32>
    %cst_9 = arith.constant dense<0.000000e+00> : vector<8x128xf32>
    %23 = tpu.matmul %21, %22, %cst_9 {dimension_numbers = #tpu.dot_dimension_numbers<[1], [0], [0], [1], [0, 0, 1, 1], [], []>} : vector<8x48xf32>, vector<48x128xf32>, vector<8x128xf32> -> vector<8x128xf32>
    %c0_10 = arith.constant 0 : index
    %c0_11 = arith.constant 0 : index
    %24 = vector.load %arg3[%c0_10, %c0_11] : memref<8x128xf32, #tpu.memory_space<vmem>>, vector<8x128xf32>
    tpu.vector_store %arg3[%c0_10, %c0_11], %23 {strides = array<i32>} : memref<8x128xf32, #tpu.memory_space<vmem>>, vector<8x128xf32>,
    %c48 = arith.constant 48 : index
    %c0_12 = arith.constant 0 : index
    %25 = vector.load %arg1[%c48, %c0_12] : memref<128x128xf32, #tpu.memory_space<vmem>>, vector<32x128xf32>
    %c80 = arith.constant 80 : index
    %c0_13 = arith.constant 0 : index
    %26 = vector.load %arg1[%c80, %c0_13] : memref<128x128xf32, #tpu.memory_space<vmem>>, vector<1x32xf32>
    %c81 = arith.constant 81 : index
    %c0_14 = arith.constant 0 : index
    %27 = vector.load %arg1[%c81, %c0_14] : memref<128x128xf32, #tpu.memory_space<vmem>>, vector<1x32xf32>
    %28 = tpu.iota {dimensions = array<i32: 1>} : vector<1x128xi32>
    %c64_i32 = arith.constant 64 : i32
    %29 = vector.broadcast %c64_i32 : i32 to vector<1x128xi32>
    %30 = arith.cmpi sge, %28, %29 : vector<1x128xi32>
    %c96_i32 = arith.constant 96 : i32
    %31 = vector.broadcast %c96_i32 : i32 to vector<1x128xi32>
    %32 = arith.cmpi slt, %28, %31 : vector<1x128xi32>
    %33 = arith.andi %30, %32 : vector<1x128xi1>
    %cst_15 = arith.constant 1.000000e+00 : f32
    %cst_16 = arith.constant 5.000000e-01 : f32
    %34 = vector.broadcast %cst_15 : f32 to vector<1x128xf32>
    %35 = vector.broadcast %cst_16 : f32 to vector<1x128xf32>
    %36 = arith.select %33, %34, %35 : vector<1x128xi1>, vector<1x128xf32>
    %cst_17 = arith.constant 0.000000e+00 : f32
    %cst_18 = arith.constant 5.000000e-01 : f32
    %37 = vector.broadcast %cst_17 : f32 to vector<1x128xf32>
    %38 = vector.broadcast %cst_18 : f32 to vector<1x128xf32>
    %39 = arith.select %33, %37, %38 : vector<1x128xi1>, vector<1x128xf32>
    %c0_i32 = arith.constant 0 : i32
    %cst_19 = arith.constant dense<0.000000e+00> : vector<1x128xf32>
    %40 = tpu.matmul %26, %25, %cst_19 {dimension_numbers = #tpu.dot_dimension_numbers<[1], [0], [0], [1], [0, 0, 1, 1], [], []>} : vector<1x32xf32>, vector<32x128xf32>, vector<1x128xf32> -> vector<1x128xf32>
    %41 = arith.index_cast %c0_i32 : i32 to index
    %c0_20 = arith.constant 0 : index
    %42 = vector.load %arg3[%41, %c0_20] : memref<8x128xf32, #tpu.memory_space<vmem>>, vector<1x128xf32>
    %43 = arith.addf %40, %42 : vector<1x128xf32>
    %44 = math.tanh %43 : vector<1x128xf32>
    %45 = arith.mulf %44, %36 : vector<1x128xf32>
    %46 = arith.addf %45, %39 : vector<1x128xf32>
    %47 = vector.extract_strided_slice %46 {offsets = [0, 0], sizes = [1, 32], strides = [1, 1]} : vector<1x128xf32> to vector<1x32xf32>
    %48 = vector.extract_strided_slice %46 {offsets = [0, 32], sizes = [1, 32], strides = [1, 1]} : vector<1x128xf32> to vector<1x32xf32>
    %49 = vector.extract_strided_slice %46 {offsets = [0, 64], sizes = [1, 32], strides = [1, 1]} : vector<1x128xf32> to vector<1x32xf32>
    %50 = vector.extract_strided_slice %46 {offsets = [0, 96], sizes = [1, 32], strides = [1, 1]} : vector<1x128xf32> to vector<1x32xf32>
    %51 = arith.mulf %48, %27 : vector<1x32xf32>
    %52 = arith.mulf %47, %49 : vector<1x32xf32>
    %53 = arith.addf %51, %52 : vector<1x32xf32>
    %54 = math.tanh %53 : vector<1x32xf32>
    %55 = arith.mulf %50, %54 : vector<1x32xf32>
    %56 = vector.extract_strided_slice %55 {offsets = [0, 0], sizes = [1, 16], strides = [1, 1]} : vector<1x32xf32> to vector<1x16xf32>
    %57 = arith.index_cast %c0_i32 : i32 to index
    %c0_21 = arith.constant 0 : index
    %58 = vector.load %arg4[%57, %c0_21] : memref<8x32xf32, #tpu.memory_space<vmem>>, vector<1x16xf32>
    tpu.vector_store %arg4[%57, %c0_21], %56 {strides = array<i32>} : memref<8x32xf32, #tpu.memory_space<vmem>>, vector<1x16xf32>,
    %59 = vector.extract_strided_slice %55 {offsets = [0, 16], sizes = [1, 16], strides = [1, 1]} : vector<1x32xf32> to vector<1x16xf32>
    %c7_i32 = arith.constant 7 : i32
    %60 = arith.subi %c7_i32, %c0_i32 : i32
    %61 = arith.index_cast %60 : i32 to index
    %c16 = arith.constant 16 : index
    %62 = vector.load %arg4[%61, %c16] : memref<8x32xf32, #tpu.memory_space<vmem>>, vector<1x16xf32>
    tpu.vector_store %arg4[%61, %c16], %59 {strides = array<i32>} : memref<8x32xf32, #tpu.memory_space<vmem>>, vector<1x16xf32>,
    %c1_i32 = arith.constant 1 : i32
    %cst_22 = arith.constant dense<0.000000e+00> : vector<1x128xf32>
    %63 = tpu.matmul %55, %25, %cst_22 {dimension_numbers = #tpu.dot_dimension_numbers<[1], [0], [0], [1], [0, 0, 1, 1], [], []>} : vector<1x32xf32>, vector<32x128xf32>, vector<1x128xf32> -> vector<1x128xf32>
    %64 = arith.index_cast %c1_i32 : i32 to index
    %c0_23 = arith.constant 0 : index
    %65 = vector.load %arg3[%64, %c0_23] : memref<8x128xf32, #tpu.memory_space<vmem>>, vector<1x128xf32>
    %66 = arith.addf %63, %65 : vector<1x128xf32>
    %67 = math.tanh %66 : vector<1x128xf32>
    %68 = arith.mulf %67, %36 : vector<1x128xf32>
    %69 = arith.addf %68, %39 : vector<1x128xf32>
    %70 = vector.extract_strided_slice %69 {offsets = [0, 0], sizes = [1, 32], strides = [1, 1]} : vector<1x128xf32> to vector<1x32xf32>
    %71 = vector.extract_strided_slice %69 {offsets = [0, 32], sizes = [1, 32], strides = [1, 1]} : vector<1x128xf32> to vector<1x32xf32>
    %72 = vector.extract_strided_slice %69 {offsets = [0, 64], sizes = [1, 32], strides = [1, 1]} : vector<1x128xf32> to vector<1x32xf32>
    %73 = vector.extract_strided_slice %69 {offsets = [0, 96], sizes = [1, 32], strides = [1, 1]} : vector<1x128xf32> to vector<1x32xf32>
    %74 = arith.mulf %71, %53 : vector<1x32xf32>
    %75 = arith.mulf %70, %72 : vector<1x32xf32>
    %76 = arith.addf %74, %75 : vector<1x32xf32>
    %77 = math.tanh %76 : vector<1x32xf32>
    %78 = arith.mulf %73, %77 : vector<1x32xf32>
    %79 = vector.extract_strided_slice %78 {offsets = [0, 0], sizes = [1, 16], strides = [1, 1]} : vector<1x32xf32> to vector<1x16xf32>
    %80 = arith.index_cast %c1_i32 : i32 to index
    %c0_24 = arith.constant 0 : index
    %81 = vector.load %arg4[%80, %c0_24] : memref<8x32xf32, #tpu.memory_space<vmem>>, vector<1x16xf32>
    tpu.vector_store %arg4[%80, %c0_24], %79 {strides = array<i32>} : memref<8x32xf32, #tpu.memory_space<vmem>>, vector<1x16xf32>,
    %82 = vector.extract_strided_slice %78 {offsets = [0, 16], sizes = [1, 16], strides = [1, 1]} : vector<1x32xf32> to vector<1x16xf32>
    %c7_i32_25 = arith.constant 7 : i32
    %83 = arith.subi %c7_i32_25, %c1_i32 : i32
    %84 = arith.index_cast %83 : i32 to index
    %c16_26 = arith.constant 16 : index
    %85 = vector.load %arg4[%84, %c16_26] : memref<8x32xf32, #tpu.memory_space<vmem>>, vector<1x16xf32>
    tpu.vector_store %arg4[%84, %c16_26], %82 {strides = array<i32>} : memref<8x32xf32, #tpu.memory_space<vmem>>, vector<1x16xf32>,
    %c2_i32 = arith.constant 2 : i32
    %cst_27 = arith.constant dense<0.000000e+00> : vector<1x128xf32>
    %86 = tpu.matmul %78, %25, %cst_27 {dimension_numbers = #tpu.dot_dimension_numbers<[1], [0], [0], [1], [0, 0, 1, 1], [], []>} : vector<1x32xf32>, vector<32x128xf32>, vector<1x128xf32> -> vector<1x128xf32>
    %87 = arith.index_cast %c2_i32 : i32 to index
    %c0_28 = arith.constant 0 : index
    %88 = vector.load %arg3[%87, %c0_28] : memref<8x128xf32, #tpu.memory_space<vmem>>, vector<1x128xf32>
    %89 = arith.addf %86, %88 : vector<1x128xf32>
    %90 = math.tanh %89 : vector<1x128xf32>
    %91 = arith.mulf %90, %36 : vector<1x128xf32>
    %92 = arith.addf %91, %39 : vector<1x128xf32>
    %93 = vector.extract_strided_slice %92 {offsets = [0, 0], sizes = [1, 32], strides = [1, 1]} : vector<1x128xf32> to vector<1x32xf32>
    %94 = vector.extract_strided_slice %92 {offsets = [0, 32], sizes = [1, 32], strides = [1, 1]} : vector<1x128xf32> to vector<1x32xf32>
    %95 = vector.extract_strided_slice %92 {offsets = [0, 64], sizes = [1, 32], strides = [1, 1]} : vector<1x128xf32> to vector<1x32xf32>
    %96 = vector.extract_strided_slice %92 {offsets = [0, 96], sizes = [1, 32], strides = [1, 1]} : vector<1x128xf32> to vector<1x32xf32>
    %97 = arith.mulf %94, %76 : vector<1x32xf32>
    %98 = arith.mulf %93, %95 : vector<1x32xf32>
    %99 = arith.addf %97, %98 : vector<1x32xf32>
    %100 = math.tanh %99 : vector<1x32xf32>
    %101 = arith.mulf %96, %100 : vector<1x32xf32>
    %102 = vector.extract_strided_slice %101 {offsets = [0, 0], sizes = [1, 16], strides = [1, 1]} : vector<1x32xf32> to vector<1x16xf32>
    %103 = arith.index_cast %c2_i32 : i32 to index
    %c0_29 = arith.constant 0 : index
    %104 = vector.load %arg4[%103, %c0_29] : memref<8x32xf32, #tpu.memory_space<vmem>>, vector<1x16xf32>
    tpu.vector_store %arg4[%103, %c0_29], %102 {strides = array<i32>} : memref<8x32xf32, #tpu.memory_space<vmem>>, vector<1x16xf32>,
    %105 = vector.extract_strided_slice %101 {offsets = [0, 16], sizes = [1, 16], strides = [1, 1]} : vector<1x32xf32> to vector<1x16xf32>
    %c7_i32_30 = arith.constant 7 : i32
    %106 = arith.subi %c7_i32_30, %c2_i32 : i32
    %107 = arith.index_cast %106 : i32 to index
    %c16_31 = arith.constant 16 : index
    %108 = vector.load %arg4[%107, %c16_31] : memref<8x32xf32, #tpu.memory_space<vmem>>, vector<1x16xf32>
    tpu.vector_store %arg4[%107, %c16_31], %105 {strides = array<i32>} : memref<8x32xf32, #tpu.memory_space<vmem>>, vector<1x16xf32>,
    %c3_i32 = arith.constant 3 : i32
    %cst_32 = arith.constant dense<0.000000e+00> : vector<1x128xf32>
    %109 = tpu.matmul %101, %25, %cst_32 {dimension_numbers = #tpu.dot_dimension_numbers<[1], [0], [0], [1], [0, 0, 1, 1], [], []>} : vector<1x32xf32>, vector<32x128xf32>, vector<1x128xf32> -> vector<1x128xf32>
    %110 = arith.index_cast %c3_i32 : i32 to index
    %c0_33 = arith.constant 0 : index
    %111 = vector.load %arg3[%110, %c0_33] : memref<8x128xf32, #tpu.memory_space<vmem>>, vector<1x128xf32>
    %112 = arith.addf %109, %111 : vector<1x128xf32>
    %113 = math.tanh %112 : vector<1x128xf32>
    %114 = arith.mulf %113, %36 : vector<1x128xf32>
    %115 = arith.addf %114, %39 : vector<1x128xf32>
    %116 = vector.extract_strided_slice %115 {offsets = [0, 0], sizes = [1, 32], strides = [1, 1]} : vector<1x128xf32> to vector<1x32xf32>
    %117 = vector.extract_strided_slice %115 {offsets = [0, 32], sizes = [1, 32], strides = [1, 1]} : vector<1x128xf32> to vector<1x32xf32>
    %118 = vector.extract_strided_slice %115 {offsets = [0, 64], sizes = [1, 32], strides = [1, 1]} : vector<1x128xf32> to vector<1x32xf32>
    %119 = vector.extract_strided_slice %115 {offsets = [0, 96], sizes = [1, 32], strides = [1, 1]} : vector<1x128xf32> to vector<1x32xf32>
    %120 = arith.mulf %117, %99 : vector<1x32xf32>
    %121 = arith.mulf %116, %118 : vector<1x32xf32>
    %122 = arith.addf %120, %121 : vector<1x32xf32>
    %123 = math.tanh %122 : vector<1x32xf32>
    %124 = arith.mulf %119, %123 : vector<1x32xf32>
    %125 = vector.extract_strided_slice %124 {offsets = [0, 0], sizes = [1, 16], strides = [1, 1]} : vector<1x32xf32> to vector<1x16xf32>
    %126 = arith.index_cast %c3_i32 : i32 to index
    %c0_34 = arith.constant 0 : index
    %127 = vector.load %arg4[%126, %c0_34] : memref<8x32xf32, #tpu.memory_space<vmem>>, vector<1x16xf32>
    tpu.vector_store %arg4[%126, %c0_34], %125 {strides = array<i32>} : memref<8x32xf32, #tpu.memory_space<vmem>>, vector<1x16xf32>,
    %128 = vector.extract_strided_slice %124 {offsets = [0, 16], sizes = [1, 16], strides = [1, 1]} : vector<1x32xf32> to vector<1x16xf32>
    %c7_i32_35 = arith.constant 7 : i32
    %129 = arith.subi %c7_i32_35, %c3_i32 : i32
    %130 = arith.index_cast %129 : i32 to index
    %c16_36 = arith.constant 16 : index
    %131 = vector.load %arg4[%130, %c16_36] : memref<8x32xf32, #tpu.memory_space<vmem>>, vector<1x16xf32>
    tpu.vector_store %arg4[%130, %c16_36], %128 {strides = array<i32>} : memref<8x32xf32, #tpu.memory_space<vmem>>, vector<1x16xf32>,
    %c4_i32 = arith.constant 4 : i32
    %cst_37 = arith.constant dense<0.000000e+00> : vector<1x128xf32>
    %132 = tpu.matmul %124, %25, %cst_37 {dimension_numbers = #tpu.dot_dimension_numbers<[1], [0], [0], [1], [0, 0, 1, 1], [], []>} : vector<1x32xf32>, vector<32x128xf32>, vector<1x128xf32> -> vector<1x128xf32>
    %133 = arith.index_cast %c4_i32 : i32 to index
    %c0_38 = arith.constant 0 : index
    %134 = vector.load %arg3[%133, %c0_38] : memref<8x128xf32, #tpu.memory_space<vmem>>, vector<1x128xf32>
    %135 = arith.addf %132, %134 : vector<1x128xf32>
    %136 = math.tanh %135 : vector<1x128xf32>
    %137 = arith.mulf %136, %36 : vector<1x128xf32>
    %138 = arith.addf %137, %39 : vector<1x128xf32>
    %139 = vector.extract_strided_slice %138 {offsets = [0, 0], sizes = [1, 32], strides = [1, 1]} : vector<1x128xf32> to vector<1x32xf32>
    %140 = vector.extract_strided_slice %138 {offsets = [0, 32], sizes = [1, 32], strides = [1, 1]} : vector<1x128xf32> to vector<1x32xf32>
    %141 = vector.extract_strided_slice %138 {offsets = [0, 64], sizes = [1, 32], strides = [1, 1]} : vector<1x128xf32> to vector<1x32xf32>
    %142 = vector.extract_strided_slice %138 {offsets = [0, 96], sizes = [1, 32], strides = [1, 1]} : vector<1x128xf32> to vector<1x32xf32>
    %143 = arith.mulf %140, %122 : vector<1x32xf32>
    %144 = arith.mulf %139, %141 : vector<1x32xf32>
    %145 = arith.addf %143, %144 : vector<1x32xf32>
    %146 = math.tanh %145 : vector<1x32xf32>
    %147 = arith.mulf %142, %146 : vector<1x32xf32>
    %148 = vector.extract_strided_slice %147 {offsets = [0, 0], sizes = [1, 16], strides = [1, 1]} : vector<1x32xf32> to vector<1x16xf32>
    %149 = arith.index_cast %c4_i32 : i32 to index
    %c0_39 = arith.constant 0 : index
    %150 = vector.load %arg4[%149, %c0_39] : memref<8x32xf32, #tpu.memory_space<vmem>>, vector<1x16xf32>
    tpu.vector_store %arg4[%149, %c0_39], %148 {strides = array<i32>} : memref<8x32xf32, #tpu.memory_space<vmem>>, vector<1x16xf32>,
    %151 = vector.extract_strided_slice %147 {offsets = [0, 16], sizes = [1, 16], strides = [1, 1]} : vector<1x32xf32> to vector<1x16xf32>
    %c7_i32_40 = arith.constant 7 : i32
    %152 = arith.subi %c7_i32_40, %c4_i32 : i32
    %153 = arith.index_cast %152 : i32 to index
    %c16_41 = arith.constant 16 : index
    %154 = vector.load %arg4[%153, %c16_41] : memref<8x32xf32, #tpu.memory_space<vmem>>, vector<1x16xf32>
    tpu.vector_store %arg4[%153, %c16_41], %151 {strides = array<i32>} : memref<8x32xf32, #tpu.memory_space<vmem>>, vector<1x16xf32>,
    %c5_i32 = arith.constant 5 : i32
    %cst_42 = arith.constant dense<0.000000e+00> : vector<1x128xf32>
    %155 = tpu.matmul %147, %25, %cst_42 {dimension_numbers = #tpu.dot_dimension_numbers<[1], [0], [0], [1], [0, 0, 1, 1], [], []>} : vector<1x32xf32>, vector<32x128xf32>, vector<1x128xf32> -> vector<1x128xf32>
    %156 = arith.index_cast %c5_i32 : i32 to index
    %c0_43 = arith.constant 0 : index
    %157 = vector.load %arg3[%156, %c0_43] : memref<8x128xf32, #tpu.memory_space<vmem>>, vector<1x128xf32>
    %158 = arith.addf %155, %157 : vector<1x128xf32>
    %159 = math.tanh %158 : vector<1x128xf32>
    %160 = arith.mulf %159, %36 : vector<1x128xf32>
    %161 = arith.addf %160, %39 : vector<1x128xf32>
    %162 = vector.extract_strided_slice %161 {offsets = [0, 0], sizes = [1, 32], strides = [1, 1]} : vector<1x128xf32> to vector<1x32xf32>
    %163 = vector.extract_strided_slice %161 {offsets = [0, 32], sizes = [1, 32], strides = [1, 1]} : vector<1x128xf32> to vector<1x32xf32>
    %164 = vector.extract_strided_slice %161 {offsets = [0, 64], sizes = [1, 32], strides = [1, 1]} : vector<1x128xf32> to vector<1x32xf32>
    %165 = vector.extract_strided_slice %161 {offsets = [0, 96], sizes = [1, 32], strides = [1, 1]} : vector<1x128xf32> to vector<1x32xf32>
    %166 = arith.mulf %163, %145 : vector<1x32xf32>
    %167 = arith.mulf %162, %164 : vector<1x32xf32>
    %168 = arith.addf %166, %167 : vector<1x32xf32>
    %169 = math.tanh %168 : vector<1x32xf32>
    %170 = arith.mulf %165, %169 : vector<1x32xf32>
    %171 = vector.extract_strided_slice %170 {offsets = [0, 0], sizes = [1, 16], strides = [1, 1]} : vector<1x32xf32> to vector<1x16xf32>
    %172 = arith.index_cast %c5_i32 : i32 to index
    %c0_44 = arith.constant 0 : index
    %173 = vector.load %arg4[%172, %c0_44] : memref<8x32xf32, #tpu.memory_space<vmem>>, vector<1x16xf32>
    tpu.vector_store %arg4[%172, %c0_44], %171 {strides = array<i32>} : memref<8x32xf32, #tpu.memory_space<vmem>>, vector<1x16xf32>,
    %174 = vector.extract_strided_slice %170 {offsets = [0, 16], sizes = [1, 16], strides = [1, 1]} : vector<1x32xf32> to vector<1x16xf32>
    %c7_i32_45 = arith.constant 7 : i32
    %175 = arith.subi %c7_i32_45, %c5_i32 : i32
    %176 = arith.index_cast %175 : i32 to index
    %c16_46 = arith.constant 16 : index
    %177 = vector.load %arg4[%176, %c16_46] : memref<8x32xf32, #tpu.memory_space<vmem>>, vector<1x16xf32>
    tpu.vector_store %arg4[%176, %c16_46], %174 {strides = array<i32>} : memref<8x32xf32, #tpu.memory_space<vmem>>, vector<1x16xf32>,
    %c6_i32 = arith.constant 6 : i32
    %cst_47 = arith.constant dense<0.000000e+00> : vector<1x128xf32>
    %178 = tpu.matmul %170, %25, %cst_47 {dimension_numbers = #tpu.dot_dimension_numbers<[1], [0], [0], [1], [0, 0, 1, 1], [], []>} : vector<1x32xf32>, vector<32x128xf32>, vector<1x128xf32> -> vector<1x128xf32>
    %179 = arith.index_cast %c6_i32 : i32 to index
    %c0_48 = arith.constant 0 : index
    %180 = vector.load %arg3[%179, %c0_48] : memref<8x128xf32, #tpu.memory_space<vmem>>, vector<1x128xf32>
    %181 = arith.addf %178, %180 : vector<1x128xf32>
    %182 = math.tanh %181 : vector<1x128xf32>
    %183 = arith.mulf %182, %36 : vector<1x128xf32>
    %184 = arith.addf %183, %39 : vector<1x128xf32>
    %185 = vector.extract_strided_slice %184 {offsets = [0, 0], sizes = [1, 32], strides = [1, 1]} : vector<1x128xf32> to vector<1x32xf32>
    %186 = vector.extract_strided_slice %184 {offsets = [0, 32], sizes = [1, 32], strides = [1, 1]} : vector<1x128xf32> to vector<1x32xf32>
    %187 = vector.extract_strided_slice %184 {offsets = [0, 64], sizes = [1, 32], strides = [1, 1]} : vector<1x128xf32> to vector<1x32xf32>
    %188 = vector.extract_strided_slice %184 {offsets = [0, 96], sizes = [1, 32], strides = [1, 1]} : vector<1x128xf32> to vector<1x32xf32>
    %189 = arith.mulf %186, %168 : vector<1x32xf32>
    %190 = arith.mulf %185, %187 : vector<1x32xf32>
    %191 = arith.addf %189, %190 : vector<1x32xf32>
    %192 = math.tanh %191 : vector<1x32xf32>
    %193 = arith.mulf %188, %192 : vector<1x32xf32>
    %194 = vector.extract_strided_slice %193 {offsets = [0, 0], sizes = [1, 16], strides = [1, 1]} : vector<1x32xf32> to vector<1x16xf32>
    %195 = arith.index_cast %c6_i32 : i32 to index
    %c0_49 = arith.constant 0 : index
    %196 = vector.load %arg4[%195, %c0_49] : memref<8x32xf32, #tpu.memory_space<vmem>>, vector<1x16xf32>
    tpu.vector_store %arg4[%195, %c0_49], %194 {strides = array<i32>} : memref<8x32xf32, #tpu.memory_space<vmem>>, vector<1x16xf32>,
    %197 = vector.extract_strided_slice %193 {offsets = [0, 16], sizes = [1, 16], strides = [1, 1]} : vector<1x32xf32> to vector<1x16xf32>
    %c7_i32_50 = arith.constant 7 : i32
    %198 = arith.subi %c7_i32_50, %c6_i32 : i32
    %199 = arith.index_cast %198 : i32 to index
    %c16_51 = arith.constant 16 : index
    %200 = vector.load %arg4[%199, %c16_51] : memref<8x32xf32, #tpu.memory_space<vmem>>, vector<1x16xf32>
    tpu.vector_store %arg4[%199, %c16_51], %197 {strides = array<i32>} : memref<8x32xf32, #tpu.memory_space<vmem>>, vector<1x16xf32>,
    %c7_i32_52 = arith.constant 7 : i32
    %cst_53 = arith.constant dense<0.000000e+00> : vector<1x128xf32>
    %201 = tpu.matmul %193, %25, %cst_53 {dimension_numbers = #tpu.dot_dimension_numbers<[1], [0], [0], [1], [0, 0, 1, 1], [], []>} : vector<1x32xf32>, vector<32x128xf32>, vector<1x128xf32> -> vector<1x128xf32>
    %202 = arith.index_cast %c7_i32_52 : i32 to index
    %c0_54 = arith.constant 0 : index
    %203 = vector.load %arg3[%202, %c0_54] : memref<8x128xf32, #tpu.memory_space<vmem>>, vector<1x128xf32>
    %204 = arith.addf %201, %203 : vector<1x128xf32>
    %205 = math.tanh %204 : vector<1x128xf32>
    %206 = arith.mulf %205, %36 : vector<1x128xf32>
    %207 = arith.addf %206, %39 : vector<1x128xf32>
    %208 = vector.extract_strided_slice %207 {offsets = [0, 0], sizes = [1, 32], strides = [1, 1]} : vector<1x128xf32> to vector<1x32xf32>
    %209 = vector.extract_strided_slice %207 {offsets = [0, 32], sizes = [1, 32], strides = [1, 1]} : vector<1x128xf32> to vector<1x32xf32>
    %210 = vector.extract_strided_slice %207 {offsets = [0, 64], sizes = [1, 32], strides = [1, 1]} : vector<1x128xf32> to vector<1x32xf32>
    %211 = vector.extract_strided_slice %207 {offsets = [0, 96], sizes = [1, 32], strides = [1, 1]} : vector<1x128xf32> to vector<1x32xf32>
    %212 = arith.mulf %209, %191 : vector<1x32xf32>
    %213 = arith.mulf %208, %210 : vector<1x32xf32>
    %214 = arith.addf %212, %213 : vector<1x32xf32>
    %215 = math.tanh %214 : vector<1x32xf32>
    %216 = arith.mulf %211, %215 : vector<1x32xf32>
    %217 = vector.extract_strided_slice %216 {offsets = [0, 0], sizes = [1, 16], strides = [1, 1]} : vector<1x32xf32> to vector<1x16xf32>
    %218 = arith.index_cast %c7_i32_52 : i32 to index
    %c0_55 = arith.constant 0 : index
    %219 = vector.load %arg4[%218, %c0_55] : memref<8x32xf32, #tpu.memory_space<vmem>>, vector<1x16xf32>
    tpu.vector_store %arg4[%218, %c0_55], %217 {strides = array<i32>} : memref<8x32xf32, #tpu.memory_space<vmem>>, vector<1x16xf32>,
    %220 = vector.extract_strided_slice %216 {offsets = [0, 16], sizes = [1, 16], strides = [1, 1]} : vector<1x32xf32> to vector<1x16xf32>
    %c7_i32_56 = arith.constant 7 : i32
    %221 = arith.subi %c7_i32_56, %c7_i32_52 : i32
    %222 = arith.index_cast %221 : i32 to index
    %c16_57 = arith.constant 16 : index
    %223 = vector.load %arg4[%222, %c16_57] : memref<8x32xf32, #tpu.memory_space<vmem>>, vector<1x16xf32>
    tpu.vector_store %arg4[%222, %c16_57], %220 {strides = array<i32>} : memref<8x32xf32, #tpu.memory_space<vmem>>, vector<1x16xf32>,
    %c8_i32 = arith.constant 8 : i32
    %c88 = arith.constant 88 : index
    %c0_58 = arith.constant 0 : index
    %224 = vector.load %arg1[%c88, %c0_58] : memref<128x128xf32, #tpu.memory_space<vmem>>, vector<32x128xf32>
    %c125 = arith.constant 125 : index
    %c0_59 = arith.constant 0 : index
    %225 = vector.load %arg1[%c125, %c0_59] : memref<128x128xf32, #tpu.memory_space<vmem>>, vector<1x5xf32>
    %c0_60 = arith.constant 0 : index
    %c0_61 = arith.constant 0 : index
    %226 = vector.load %arg4[%c0_60, %c0_61] : memref<8x32xf32, #tpu.memory_space<vmem>>, vector<8x32xf32>
    %cst_62 = arith.constant dense<0.000000e+00> : vector<8x128xf32>
    %227 = tpu.matmul %226, %224, %cst_62 {dimension_numbers = #tpu.dot_dimension_numbers<[1], [0], [0], [1], [0, 0, 1, 1], [], []>} : vector<8x32xf32>, vector<32x128xf32>, vector<8x128xf32> -> vector<8x128xf32>
    %228 = vector.extract_strided_slice %227 {offsets = [0, 0], sizes = [8, 5], strides = [1, 1]} : vector<8x128xf32> to vector<8x5xf32>
    %229 = vector.broadcast %225 : vector<1x5xf32> to vector<8x5xf32>
    %230 = arith.addf %228, %229 : vector<8x5xf32>
    %c0_63 = arith.constant 0 : index
    %c0_64 = arith.constant 0 : index
    %231 = vector.load %arg5[%c0_63, %c0_64] : memref<8x5xf32, #tpu.memory_space<vmem>>, vector<8x5xf32>
    tpu.vector_store %arg5[%c0_63, %c0_64], %230 {strides = array<i32>} : memref<8x5xf32, #tpu.memory_space<vmem>>, vector<8x5xf32>,
    %c120 = arith.constant 120 : index
    %c0_65 = arith.constant 0 : index
    %232 = vector.load %arg1[%c120, %c0_65] : memref<128x128xf32, #tpu.memory_space<vmem>>, vector<5x5xf32>
    %233 = tpu.iota {dimensions = array<i32: 0>} : vector<5x5xi32>
    %234 = tpu.iota {dimensions = array<i32: 1>} : vector<5x5xi32>
    %235 = arith.cmpi eq, %233, %234 : vector<5x5xi32>
    %236 = arith.sitofp %233 : vector<5x5xi32> to vector<5x5xf32>
    %237 = tpu.iota {dimensions = array<i32: 1>} : vector<1x5xi32>
    %238 = tpu.iota {dimensions = array<i32: 0>} : vector<5x1xi32>
    %c3_i32_66 = arith.constant 3 : i32
    %239 = vector.broadcast %c3_i32_66 : i32 to vector<5x1xi32>
    %240 = arith.cmpi eq, %238, %239 : vector<5x1xi32>
    %cst_67 = arith.constant 0.000000e+00 : f32
    %cst_68 = arith.constant -1.000000e+04 : f32
    %241 = vector.broadcast %cst_67 : f32 to vector<5x1xf32>
    %242 = vector.broadcast %cst_68 : f32 to vector<5x1xf32>
    %243 = arith.select %240, %241, %242 : vector<5x1xi1>, vector<5x1xf32>
    %c0_i32_69 = arith.constant 0 : i32
    %244 = vector.broadcast %243 : vector<5x1xf32> to vector<5x5xf32>
    %245 = arith.addf %244, %232 : vector<5x5xf32>
    %246 = arith.index_cast %c0_i32_69 : i32 to index
    %c0_70 = arith.constant 0 : index
    %247 = vector.load %arg5[%246, %c0_70] : memref<8x5xf32, #tpu.memory_space<vmem>>, vector<1x5xf32>
    %248 = vector.broadcast %247 : vector<1x5xf32> to vector<5x5xf32>
    %249 = arith.addf %245, %248 : vector<5x5xf32>
    %cst_71 = arith.constant dense<0xFF800000> : vector<5xf32>
    %250 = vector.multi_reduction <maximumf>, %249, %cst_71 [0] : vector<5x5xf32> to vector<5xf32>
    %251 = vector.shape_cast %250 : vector<5xf32> to vector<1x5xf32>
    %252 = vector.broadcast %251 : vector<1x5xf32> to vector<5x5xf32>
    %253 = arith.cmpf oge, %249, %252 : vector<5x5xf32>
    %cst_72 = arith.constant 5.000000e+00 : f32
    %254 = vector.broadcast %cst_72 : f32 to vector<5x5xf32>
    %255 = arith.select %253, %236, %254 : vector<5x5xi1>, vector<5x5xf32>
    %cst_73 = arith.constant dense<0x7F800000> : vector<5xf32>
    %256 = vector.multi_reduction <minimumf>, %255, %cst_73 [0] : vector<5x5xf32> to vector<5xf32>
    %257 = vector.shape_cast %256 : vector<5xf32> to vector<1x5xf32>
    %258 = arith.fptosi %257 : vector<1x5xf32> to vector<1x5xi32>
    %259 = arith.index_cast %c0_i32_69 : i32 to index
    %c0_74 = arith.constant 0 : index
    %260 = vector.load %arg6[%259, %c0_74] : memref<8x5xi32, #tpu.memory_space<vmem>>, vector<1x5xi32>
    tpu.vector_store %arg6[%259, %c0_74], %258 {strides = array<i32>} : memref<8x5xi32, #tpu.memory_space<vmem>>, vector<1x5xi32>,
    %cst_75 = arith.constant -1.000000e+30 : f32
    %261 = vector.shape_cast %251 : vector<1x5xf32> to vector<1x5xf32>
    %262 = vector.broadcast %261 : vector<1x5xf32> to vector<5x5xf32>
    %263 = vector.broadcast %cst_75 : f32 to vector<5x5xf32>
    %264 = arith.select %235, %262, %263 : vector<5x5xi1>, vector<5x5xf32>
    %cst_76 = arith.constant dense<0xFF800000> : vector<5xf32>
    %265 = vector.multi_reduction <maximumf>, %264, %cst_76 [1] : vector<5x5xf32> to vector<5xf32>
    %266 = vector.shape_cast %265 : vector<5xf32> to vector<5x1xf32>
    %c1_i32_77 = arith.constant 1 : i32
    %267 = vector.broadcast %266 : vector<5x1xf32> to vector<5x5xf32>
    %268 = arith.addf %267, %232 : vector<5x5xf32>
    %269 = arith.index_cast %c1_i32_77 : i32 to index
    %c0_78 = arith.constant 0 : index
    %270 = vector.load %arg5[%269, %c0_78] : memref<8x5xf32, #tpu.memory_space<vmem>>, vector<1x5xf32>
    %271 = vector.broadcast %270 : vector<1x5xf32> to vector<5x5xf32>
    %272 = arith.addf %268, %271 : vector<5x5xf32>
    %cst_79 = arith.constant dense<0xFF800000> : vector<5xf32>
    %273 = vector.multi_reduction <maximumf>, %272, %cst_79 [0] : vector<5x5xf32> to vector<5xf32>
    %274 = vector.shape_cast %273 : vector<5xf32> to vector<1x5xf32>
    %275 = vector.broadcast %274 : vector<1x5xf32> to vector<5x5xf32>
    %276 = arith.cmpf oge, %272, %275 : vector<5x5xf32>
    %cst_80 = arith.constant 5.000000e+00 : f32
    %277 = vector.broadcast %cst_80 : f32 to vector<5x5xf32>
    %278 = arith.select %276, %236, %277 : vector<5x5xi1>, vector<5x5xf32>
    %cst_81 = arith.constant dense<0x7F800000> : vector<5xf32>
    %279 = vector.multi_reduction <minimumf>, %278, %cst_81 [0] : vector<5x5xf32> to vector<5xf32>
    %280 = vector.shape_cast %279 : vector<5xf32> to vector<1x5xf32>
    %281 = arith.fptosi %280 : vector<1x5xf32> to vector<1x5xi32>
    %282 = arith.index_cast %c1_i32_77 : i32 to index
    %c0_82 = arith.constant 0 : index
    %283 = vector.load %arg6[%282, %c0_82] : memref<8x5xi32, #tpu.memory_space<vmem>>, vector<1x5xi32>
    tpu.vector_store %arg6[%282, %c0_82], %281 {strides = array<i32>} : memref<8x5xi32, #tpu.memory_space<vmem>>, vector<1x5xi32>,
    %cst_83 = arith.constant -1.000000e+30 : f32
    %284 = vector.shape_cast %274 : vector<1x5xf32> to vector<1x5xf32>
    %285 = vector.broadcast %284 : vector<1x5xf32> to vector<5x5xf32>
    %286 = vector.broadcast %cst_83 : f32 to vector<5x5xf32>
    %287 = arith.select %235, %285, %286 : vector<5x5xi1>, vector<5x5xf32>
    %cst_84 = arith.constant dense<0xFF800000> : vector<5xf32>
    %288 = vector.multi_reduction <maximumf>, %287, %cst_84 [1] : vector<5x5xf32> to vector<5xf32>
    %289 = vector.shape_cast %288 : vector<5xf32> to vector<5x1xf32>
    %c2_i32_85 = arith.constant 2 : i32
    %290 = vector.broadcast %289 : vector<5x1xf32> to vector<5x5xf32>
    %291 = arith.addf %290, %232 : vector<5x5xf32>
    %292 = arith.index_cast %c2_i32_85 : i32 to index
    %c0_86 = arith.constant 0 : index
    %293 = vector.load %arg5[%292, %c0_86] : memref<8x5xf32, #tpu.memory_space<vmem>>, vector<1x5xf32>
    %294 = vector.broadcast %293 : vector<1x5xf32> to vector<5x5xf32>
    %295 = arith.addf %291, %294 : vector<5x5xf32>
    %cst_87 = arith.constant dense<0xFF800000> : vector<5xf32>
    %296 = vector.multi_reduction <maximumf>, %295, %cst_87 [0] : vector<5x5xf32> to vector<5xf32>
    %297 = vector.shape_cast %296 : vector<5xf32> to vector<1x5xf32>
    %298 = vector.broadcast %297 : vector<1x5xf32> to vector<5x5xf32>
    %299 = arith.cmpf oge, %295, %298 : vector<5x5xf32>
    %cst_88 = arith.constant 5.000000e+00 : f32
    %300 = vector.broadcast %cst_88 : f32 to vector<5x5xf32>
    %301 = arith.select %299, %236, %300 : vector<5x5xi1>, vector<5x5xf32>
    %cst_89 = arith.constant dense<0x7F800000> : vector<5xf32>
    %302 = vector.multi_reduction <minimumf>, %301, %cst_89 [0] : vector<5x5xf32> to vector<5xf32>
    %303 = vector.shape_cast %302 : vector<5xf32> to vector<1x5xf32>
    %304 = arith.fptosi %303 : vector<1x5xf32> to vector<1x5xi32>
    %305 = arith.index_cast %c2_i32_85 : i32 to index
    %c0_90 = arith.constant 0 : index
    %306 = vector.load %arg6[%305, %c0_90] : memref<8x5xi32, #tpu.memory_space<vmem>>, vector<1x5xi32>
    tpu.vector_store %arg6[%305, %c0_90], %304 {strides = array<i32>} : memref<8x5xi32, #tpu.memory_space<vmem>>, vector<1x5xi32>,
    %cst_91 = arith.constant -1.000000e+30 : f32
    %307 = vector.shape_cast %297 : vector<1x5xf32> to vector<1x5xf32>
    %308 = vector.broadcast %307 : vector<1x5xf32> to vector<5x5xf32>
    %309 = vector.broadcast %cst_91 : f32 to vector<5x5xf32>
    %310 = arith.select %235, %308, %309 : vector<5x5xi1>, vector<5x5xf32>
    %cst_92 = arith.constant dense<0xFF800000> : vector<5xf32>
    %311 = vector.multi_reduction <maximumf>, %310, %cst_92 [1] : vector<5x5xf32> to vector<5xf32>
    %312 = vector.shape_cast %311 : vector<5xf32> to vector<5x1xf32>
    %c3_i32_93 = arith.constant 3 : i32
    %313 = vector.broadcast %312 : vector<5x1xf32> to vector<5x5xf32>
    %314 = arith.addf %313, %232 : vector<5x5xf32>
    %315 = arith.index_cast %c3_i32_93 : i32 to index
    %c0_94 = arith.constant 0 : index
    %316 = vector.load %arg5[%315, %c0_94] : memref<8x5xf32, #tpu.memory_space<vmem>>, vector<1x5xf32>
    %317 = vector.broadcast %316 : vector<1x5xf32> to vector<5x5xf32>
    %318 = arith.addf %314, %317 : vector<5x5xf32>
    %cst_95 = arith.constant dense<0xFF800000> : vector<5xf32>
    %319 = vector.multi_reduction <maximumf>, %318, %cst_95 [0] : vector<5x5xf32> to vector<5xf32>
    %320 = vector.shape_cast %319 : vector<5xf32> to vector<1x5xf32>
    %321 = vector.broadcast %320 : vector<1x5xf32> to vector<5x5xf32>
    %322 = arith.cmpf oge, %318, %321 : vector<5x5xf32>
    %cst_96 = arith.constant 5.000000e+00 : f32
    %323 = vector.broadcast %cst_96 : f32 to vector<5x5xf32>
    %324 = arith.select %322, %236, %323 : vector<5x5xi1>, vector<5x5xf32>
    %cst_97 = arith.constant dense<0x7F800000> : vector<5xf32>
    %325 = vector.multi_reduction <minimumf>, %324, %cst_97 [0] : vector<5x5xf32> to vector<5xf32>
    %326 = vector.shape_cast %325 : vector<5xf32> to vector<1x5xf32>
    %327 = arith.fptosi %326 : vector<1x5xf32> to vector<1x5xi32>
    %328 = arith.index_cast %c3_i32_93 : i32 to index
    %c0_98 = arith.constant 0 : index
    %329 = vector.load %arg6[%328, %c0_98] : memref<8x5xi32, #tpu.memory_space<vmem>>, vector<1x5xi32>
    tpu.vector_store %arg6[%328, %c0_98], %327 {strides = array<i32>} : memref<8x5xi32, #tpu.memory_space<vmem>>, vector<1x5xi32>,
    %cst_99 = arith.constant -1.000000e+30 : f32
    %330 = vector.shape_cast %320 : vector<1x5xf32> to vector<1x5xf32>
    %331 = vector.broadcast %330 : vector<1x5xf32> to vector<5x5xf32>
    %332 = vector.broadcast %cst_99 : f32 to vector<5x5xf32>
    %333 = arith.select %235, %331, %332 : vector<5x5xi1>, vector<5x5xf32>
    %cst_100 = arith.constant dense<0xFF800000> : vector<5xf32>
    %334 = vector.multi_reduction <maximumf>, %333, %cst_100 [1] : vector<5x5xf32> to vector<5xf32>
    %335 = vector.shape_cast %334 : vector<5xf32> to vector<5x1xf32>
    %c4_i32_101 = arith.constant 4 : i32
    %336 = vector.broadcast %335 : vector<5x1xf32> to vector<5x5xf32>
    %337 = arith.addf %336, %232 : vector<5x5xf32>
    %338 = arith.index_cast %c4_i32_101 : i32 to index
    %c0_102 = arith.constant 0 : index
    %339 = vector.load %arg5[%338, %c0_102] : memref<8x5xf32, #tpu.memory_space<vmem>>, vector<1x5xf32>
    %340 = vector.broadcast %339 : vector<1x5xf32> to vector<5x5xf32>
    %341 = arith.addf %337, %340 : vector<5x5xf32>
    %cst_103 = arith.constant dense<0xFF800000> : vector<5xf32>
    %342 = vector.multi_reduction <maximumf>, %341, %cst_103 [0] : vector<5x5xf32> to vector<5xf32>
    %343 = vector.shape_cast %342 : vector<5xf32> to vector<1x5xf32>
    %344 = vector.broadcast %343 : vector<1x5xf32> to vector<5x5xf32>
    %345 = arith.cmpf oge, %341, %344 : vector<5x5xf32>
    %cst_104 = arith.constant 5.000000e+00 : f32
    %346 = vector.broadcast %cst_104 : f32 to vector<5x5xf32>
    %347 = arith.select %345, %236, %346 : vector<5x5xi1>, vector<5x5xf32>
    %cst_105 = arith.constant dense<0x7F800000> : vector<5xf32>
    %348 = vector.multi_reduction <minimumf>, %347, %cst_105 [0] : vector<5x5xf32> to vector<5xf32>
    %349 = vector.shape_cast %348 : vector<5xf32> to vector<1x5xf32>
    %350 = arith.fptosi %349 : vector<1x5xf32> to vector<1x5xi32>
    %351 = arith.index_cast %c4_i32_101 : i32 to index
    %c0_106 = arith.constant 0 : index
    %352 = vector.load %arg6[%351, %c0_106] : memref<8x5xi32, #tpu.memory_space<vmem>>, vector<1x5xi32>
    tpu.vector_store %arg6[%351, %c0_106], %350 {strides = array<i32>} : memref<8x5xi32, #tpu.memory_space<vmem>>, vector<1x5xi32>,
    %cst_107 = arith.constant -1.000000e+30 : f32
    %353 = vector.shape_cast %343 : vector<1x5xf32> to vector<1x5xf32>
    %354 = vector.broadcast %353 : vector<1x5xf32> to vector<5x5xf32>
    %355 = vector.broadcast %cst_107 : f32 to vector<5x5xf32>
    %356 = arith.select %235, %354, %355 : vector<5x5xi1>, vector<5x5xf32>
    %cst_108 = arith.constant dense<0xFF800000> : vector<5xf32>
    %357 = vector.multi_reduction <maximumf>, %356, %cst_108 [1] : vector<5x5xf32> to vector<5xf32>
    %358 = vector.shape_cast %357 : vector<5xf32> to vector<5x1xf32>
    %c5_i32_109 = arith.constant 5 : i32
    %359 = vector.broadcast %358 : vector<5x1xf32> to vector<5x5xf32>
    %360 = arith.addf %359, %232 : vector<5x5xf32>
    %361 = arith.index_cast %c5_i32_109 : i32 to index
    %c0_110 = arith.constant 0 : index
    %362 = vector.load %arg5[%361, %c0_110] : memref<8x5xf32, #tpu.memory_space<vmem>>, vector<1x5xf32>
    %363 = vector.broadcast %362 : vector<1x5xf32> to vector<5x5xf32>
    %364 = arith.addf %360, %363 : vector<5x5xf32>
    %cst_111 = arith.constant dense<0xFF800000> : vector<5xf32>
    %365 = vector.multi_reduction <maximumf>, %364, %cst_111 [0] : vector<5x5xf32> to vector<5xf32>
    %366 = vector.shape_cast %365 : vector<5xf32> to vector<1x5xf32>
    %367 = vector.broadcast %366 : vector<1x5xf32> to vector<5x5xf32>
    %368 = arith.cmpf oge, %364, %367 : vector<5x5xf32>
    %cst_112 = arith.constant 5.000000e+00 : f32
    %369 = vector.broadcast %cst_112 : f32 to vector<5x5xf32>
    %370 = arith.select %368, %236, %369 : vector<5x5xi1>, vector<5x5xf32>
    %cst_113 = arith.constant dense<0x7F800000> : vector<5xf32>
    %371 = vector.multi_reduction <minimumf>, %370, %cst_113 [0] : vector<5x5xf32> to vector<5xf32>
    %372 = vector.shape_cast %371 : vector<5xf32> to vector<1x5xf32>
    %373 = arith.fptosi %372 : vector<1x5xf32> to vector<1x5xi32>
    %374 = arith.index_cast %c5_i32_109 : i32 to index
    %c0_114 = arith.constant 0 : index
    %375 = vector.load %arg6[%374, %c0_114] : memref<8x5xi32, #tpu.memory_space<vmem>>, vector<1x5xi32>
    tpu.vector_store %arg6[%374, %c0_114], %373 {strides = array<i32>} : memref<8x5xi32, #tpu.memory_space<vmem>>, vector<1x5xi32>,
    %cst_115 = arith.constant -1.000000e+30 : f32
    %376 = vector.shape_cast %366 : vector<1x5xf32> to vector<1x5xf32>
    %377 = vector.broadcast %376 : vector<1x5xf32> to vector<5x5xf32>
    %378 = vector.broadcast %cst_115 : f32 to vector<5x5xf32>
    %379 = arith.select %235, %377, %378 : vector<5x5xi1>, vector<5x5xf32>
    %cst_116 = arith.constant dense<0xFF800000> : vector<5xf32>
    %380 = vector.multi_reduction <maximumf>, %379, %cst_116 [1] : vector<5x5xf32> to vector<5xf32>
    %381 = vector.shape_cast %380 : vector<5xf32> to vector<5x1xf32>
    %c6_i32_117 = arith.constant 6 : i32
    %382 = vector.broadcast %381 : vector<5x1xf32> to vector<5x5xf32>
    %383 = arith.addf %382, %232 : vector<5x5xf32>
    %384 = arith.index_cast %c6_i32_117 : i32 to index
    %c0_118 = arith.constant 0 : index
    %385 = vector.load %arg5[%384, %c0_118] : memref<8x5xf32, #tpu.memory_space<vmem>>, vector<1x5xf32>
    %386 = vector.broadcast %385 : vector<1x5xf32> to vector<5x5xf32>
    %387 = arith.addf %383, %386 : vector<5x5xf32>
    %cst_119 = arith.constant dense<0xFF800000> : vector<5xf32>
    %388 = vector.multi_reduction <maximumf>, %387, %cst_119 [0] : vector<5x5xf32> to vector<5xf32>
    %389 = vector.shape_cast %388 : vector<5xf32> to vector<1x5xf32>
    %390 = vector.broadcast %389 : vector<1x5xf32> to vector<5x5xf32>
    %391 = arith.cmpf oge, %387, %390 : vector<5x5xf32>
    %cst_120 = arith.constant 5.000000e+00 : f32
    %392 = vector.broadcast %cst_120 : f32 to vector<5x5xf32>
    %393 = arith.select %391, %236, %392 : vector<5x5xi1>, vector<5x5xf32>
    %cst_121 = arith.constant dense<0x7F800000> : vector<5xf32>
    %394 = vector.multi_reduction <minimumf>, %393, %cst_121 [0] : vector<5x5xf32> to vector<5xf32>
    %395 = vector.shape_cast %394 : vector<5xf32> to vector<1x5xf32>
    %396 = arith.fptosi %395 : vector<1x5xf32> to vector<1x5xi32>
    %397 = arith.index_cast %c6_i32_117 : i32 to index
    %c0_122 = arith.constant 0 : index
    %398 = vector.load %arg6[%397, %c0_122] : memref<8x5xi32, #tpu.memory_space<vmem>>, vector<1x5xi32>
    tpu.vector_store %arg6[%397, %c0_122], %396 {strides = array<i32>} : memref<8x5xi32, #tpu.memory_space<vmem>>, vector<1x5xi32>,
    %cst_123 = arith.constant -1.000000e+30 : f32
    %399 = vector.shape_cast %389 : vector<1x5xf32> to vector<1x5xf32>
    %400 = vector.broadcast %399 : vector<1x5xf32> to vector<5x5xf32>
    %401 = vector.broadcast %cst_123 : f32 to vector<5x5xf32>
    %402 = arith.select %235, %400, %401 : vector<5x5xi1>, vector<5x5xf32>
    %cst_124 = arith.constant dense<0xFF800000> : vector<5xf32>
    %403 = vector.multi_reduction <maximumf>, %402, %cst_124 [1] : vector<5x5xf32> to vector<5xf32>
    %404 = vector.shape_cast %403 : vector<5xf32> to vector<5x1xf32>
    %c7_i32_125 = arith.constant 7 : i32
    %405 = vector.broadcast %404 : vector<5x1xf32> to vector<5x5xf32>
    %406 = arith.addf %405, %232 : vector<5x5xf32>
    %407 = arith.index_cast %c7_i32_125 : i32 to index
    %c0_126 = arith.constant 0 : index
    %408 = vector.load %arg5[%407, %c0_126] : memref<8x5xf32, #tpu.memory_space<vmem>>, vector<1x5xf32>
    %409 = vector.broadcast %408 : vector<1x5xf32> to vector<5x5xf32>
    %410 = arith.addf %406, %409 : vector<5x5xf32>
    %cst_127 = arith.constant dense<0xFF800000> : vector<5xf32>
    %411 = vector.multi_reduction <maximumf>, %410, %cst_127 [0] : vector<5x5xf32> to vector<5xf32>
    %412 = vector.shape_cast %411 : vector<5xf32> to vector<1x5xf32>
    %413 = vector.broadcast %412 : vector<1x5xf32> to vector<5x5xf32>
    %414 = arith.cmpf oge, %410, %413 : vector<5x5xf32>
    %cst_128 = arith.constant 5.000000e+00 : f32
    %415 = vector.broadcast %cst_128 : f32 to vector<5x5xf32>
    %416 = arith.select %414, %236, %415 : vector<5x5xi1>, vector<5x5xf32>
    %cst_129 = arith.constant dense<0x7F800000> : vector<5xf32>
    %417 = vector.multi_reduction <minimumf>, %416, %cst_129 [0] : vector<5x5xf32> to vector<5xf32>
    %418 = vector.shape_cast %417 : vector<5xf32> to vector<1x5xf32>
    %419 = arith.fptosi %418 : vector<1x5xf32> to vector<1x5xi32>
    %420 = arith.index_cast %c7_i32_125 : i32 to index
    %c0_130 = arith.constant 0 : index
    %421 = vector.load %arg6[%420, %c0_130] : memref<8x5xi32, #tpu.memory_space<vmem>>, vector<1x5xi32>
    tpu.vector_store %arg6[%420, %c0_130], %419 {strides = array<i32>} : memref<8x5xi32, #tpu.memory_space<vmem>>, vector<1x5xi32>,
    %cst_131 = arith.constant -1.000000e+30 : f32
    %422 = vector.shape_cast %412 : vector<1x5xf32> to vector<1x5xf32>
    %423 = vector.broadcast %422 : vector<1x5xf32> to vector<5x5xf32>
    %424 = vector.broadcast %cst_131 : f32 to vector<5x5xf32>
    %425 = arith.select %235, %423, %424 : vector<5x5xi1>, vector<5x5xf32>
    %cst_132 = arith.constant dense<0xFF800000> : vector<5xf32>
    %426 = vector.multi_reduction <maximumf>, %425, %cst_132 [1] : vector<5x5xf32> to vector<5xf32>
    %427 = vector.shape_cast %426 : vector<5xf32> to vector<5x1xf32>
    %c8_i32_133 = arith.constant 8 : i32
    %428 = vector.extract_strided_slice %232 {offsets = [0, 4], sizes = [5, 1], strides = [1, 1]} : vector<5x5xf32> to vector<5x1xf32>
    %429 = arith.addf %427, %428 : vector<5x1xf32>
    %cst_134 = arith.constant dense<0xFF800000> : vector<1xf32>
    %430 = vector.multi_reduction <maximumf>, %429, %cst_134 [0] : vector<5x1xf32> to vector<1xf32>
    %431 = vector.shape_cast %430 : vector<1xf32> to vector<1x1xf32>
    %432 = vector.broadcast %431 : vector<1x1xf32> to vector<5x1xf32>
    %433 = arith.cmpf oge, %429, %432 : vector<5x1xf32>
    %434 = arith.sitofp %238 : vector<5x1xi32> to vector<5x1xf32>
    %cst_135 = arith.constant 5.000000e+00 : f32
    %435 = vector.broadcast %cst_135 : f32 to vector<5x1xf32>
    %436 = arith.select %433, %434, %435 : vector<5x1xi1>, vector<5x1xf32>
    %cst_136 = arith.constant dense<0x7F800000> : vector<1xf32>
    %437 = vector.multi_reduction <minimumf>, %436, %cst_136 [0] : vector<5x1xf32> to vector<1xf32>
    %438 = vector.shape_cast %437 : vector<1xf32> to vector<1x1xf32>
    %439 = arith.fptosi %438 : vector<1x1xf32> to vector<1x1xi32>
    %440 = tpu.iota {dimensions = array<i32: 1>} : vector<1x8xi32>
    %c7_i32_137 = arith.constant 7 : i32
    %441 = vector.broadcast %c7_i32_137 : i32 to vector<1x8xi32>
    %442 = arith.cmpi eq, %440, %441 : vector<1x8xi32>
    %c0_i32_138 = arith.constant 0 : i32
    %443 = vector.broadcast %c0_i32_138 : i32 to vector<1x8xi32>
    %444 = vector.shape_cast %439 : vector<1x1xi32> to vector<1x1xi32>
    %445 = vector.broadcast %444 : vector<1x1xi32> to vector<1x8xi32>
    %446 = arith.select %442, %445, %443 : vector<1x8xi1>, vector<1x8xi32>
    %c0_i32_139 = arith.constant 0 : i32
    %c6_i32_140 = arith.constant 6 : i32
    %447 = arith.subi %c6_i32_140, %c0_i32_139 : i32
    %c1_i32_141 = arith.constant 1 : i32
    %448 = arith.addi %447, %c1_i32_141 : i32
    %449 = arith.index_cast %448 : i32 to index
    %c0_142 = arith.constant 0 : index
    %450 = vector.load %arg6[%449, %c0_142] : memref<8x5xi32, #tpu.memory_space<vmem>>, vector<1x5xi32>
    %451 = vector.broadcast %439 : vector<1x1xi32> to vector<1x5xi32>
    %452 = arith.cmpi eq, %237, %451 : vector<1x5xi32>
    %c0_i32_143 = arith.constant 0 : i32
    %453 = vector.broadcast %c0_i32_143 : i32 to vector<1x5xi32>
    %454 = arith.select %452, %450, %453 : vector<1x5xi1>, vector<1x5xi32>
    %cst_144 = arith.constant dense<0> : vector<1xi32>
    %455 = vector.multi_reduction <add>, %454, %cst_144 [1] : vector<1x5xi32> to vector<1xi32>
    %456 = vector.shape_cast %455 : vector<1xi32> to vector<1x1xi32>
    %457 = vector.broadcast %447 : i32 to vector<1x8xi32>
    %458 = arith.cmpi eq, %440, %457 : vector<1x8xi32>
    %459 = vector.shape_cast %456 : vector<1x1xi32> to vector<1x1xi32>
    %460 = vector.broadcast %459 : vector<1x1xi32> to vector<1x8xi32>
    %461 = arith.select %458, %460, %446 : vector<1x8xi1>, vector<1x8xi32>
    %c1_i32_145 = arith.constant 1 : i32
    %c6_i32_146 = arith.constant 6 : i32
    %462 = arith.subi %c6_i32_146, %c1_i32_145 : i32
    %c1_i32_147 = arith.constant 1 : i32
    %463 = arith.addi %462, %c1_i32_147 : i32
    %464 = arith.index_cast %463 : i32 to index
    %c0_148 = arith.constant 0 : index
    %465 = vector.load %arg6[%464, %c0_148] : memref<8x5xi32, #tpu.memory_space<vmem>>, vector<1x5xi32>
    %466 = vector.broadcast %456 : vector<1x1xi32> to vector<1x5xi32>
    %467 = arith.cmpi eq, %237, %466 : vector<1x5xi32>
    %c0_i32_149 = arith.constant 0 : i32
    %468 = vector.broadcast %c0_i32_149 : i32 to vector<1x5xi32>
    %469 = arith.select %467, %465, %468 : vector<1x5xi1>, vector<1x5xi32>
    %cst_150 = arith.constant dense<0> : vector<1xi32>
    %470 = vector.multi_reduction <add>, %469, %cst_150 [1] : vector<1x5xi32> to vector<1xi32>
    %471 = vector.shape_cast %470 : vector<1xi32> to vector<1x1xi32>
    %472 = vector.broadcast %462 : i32 to vector<1x8xi32>
    %473 = arith.cmpi eq, %440, %472 : vector<1x8xi32>
    %474 = vector.shape_cast %471 : vector<1x1xi32> to vector<1x1xi32>
    %475 = vector.broadcast %474 : vector<1x1xi32> to vector<1x8xi32>
    %476 = arith.select %473, %475, %461 : vector<1x8xi1>, vector<1x8xi32>
    %c2_i32_151 = arith.constant 2 : i32
    %c6_i32_152 = arith.constant 6 : i32
    %477 = arith.subi %c6_i32_152, %c2_i32_151 : i32
    %c1_i32_153 = arith.constant 1 : i32
    %478 = arith.addi %477, %c1_i32_153 : i32
    %479 = arith.index_cast %478 : i32 to index
    %c0_154 = arith.constant 0 : index
    %480 = vector.load %arg6[%479, %c0_154] : memref<8x5xi32, #tpu.memory_space<vmem>>, vector<1x5xi32>
    %481 = vector.broadcast %471 : vector<1x1xi32> to vector<1x5xi32>
    %482 = arith.cmpi eq, %237, %481 : vector<1x5xi32>
    %c0_i32_155 = arith.constant 0 : i32
    %483 = vector.broadcast %c0_i32_155 : i32 to vector<1x5xi32>
    %484 = arith.select %482, %480, %483 : vector<1x5xi1>, vector<1x5xi32>
    %cst_156 = arith.constant dense<0> : vector<1xi32>
    %485 = vector.multi_reduction <add>, %484, %cst_156 [1] : vector<1x5xi32> to vector<1xi32>
    %486 = vector.shape_cast %485 : vector<1xi32> to vector<1x1xi32>
    %487 = vector.broadcast %477 : i32 to vector<1x8xi32>
    %488 = arith.cmpi eq, %440, %487 : vector<1x8xi32>
    %489 = vector.shape_cast %486 : vector<1x1xi32> to vector<1x1xi32>
    %490 = vector.broadcast %489 : vector<1x1xi32> to vector<1x8xi32>
    %491 = arith.select %488, %490, %476 : vector<1x8xi1>, vector<1x8xi32>
    %c3_i32_157 = arith.constant 3 : i32
    %c6_i32_158 = arith.constant 6 : i32
    %492 = arith.subi %c6_i32_158, %c3_i32_157 : i32
    %c1_i32_159 = arith.constant 1 : i32
    %493 = arith.addi %492, %c1_i32_159 : i32
    %494 = arith.index_cast %493 : i32 to index
    %c0_160 = arith.constant 0 : index
    %495 = vector.load %arg6[%494, %c0_160] : memref<8x5xi32, #tpu.memory_space<vmem>>, vector<1x5xi32>
    %496 = vector.broadcast %486 : vector<1x1xi32> to vector<1x5xi32>
    %497 = arith.cmpi eq, %237, %496 : vector<1x5xi32>
    %c0_i32_161 = arith.constant 0 : i32
    %498 = vector.broadcast %c0_i32_161 : i32 to vector<1x5xi32>
    %499 = arith.select %497, %495, %498 : vector<1x5xi1>, vector<1x5xi32>
    %cst_162 = arith.constant dense<0> : vector<1xi32>
    %500 = vector.multi_reduction <add>, %499, %cst_162 [1] : vector<1x5xi32> to vector<1xi32>
    %501 = vector.shape_cast %500 : vector<1xi32> to vector<1x1xi32>
    %502 = vector.broadcast %492 : i32 to vector<1x8xi32>
    %503 = arith.cmpi eq, %440, %502 : vector<1x8xi32>
    %504 = vector.shape_cast %501 : vector<1x1xi32> to vector<1x1xi32>
    %505 = vector.broadcast %504 : vector<1x1xi32> to vector<1x8xi32>
    %506 = arith.select %503, %505, %491 : vector<1x8xi1>, vector<1x8xi32>
    %c4_i32_163 = arith.constant 4 : i32
    %c6_i32_164 = arith.constant 6 : i32
    %507 = arith.subi %c6_i32_164, %c4_i32_163 : i32
    %c1_i32_165 = arith.constant 1 : i32
    %508 = arith.addi %507, %c1_i32_165 : i32
    %509 = arith.index_cast %508 : i32 to index
    %c0_166 = arith.constant 0 : index
    %510 = vector.load %arg6[%509, %c0_166] : memref<8x5xi32, #tpu.memory_space<vmem>>, vector<1x5xi32>
    %511 = vector.broadcast %501 : vector<1x1xi32> to vector<1x5xi32>
    %512 = arith.cmpi eq, %237, %511 : vector<1x5xi32>
    %c0_i32_167 = arith.constant 0 : i32
    %513 = vector.broadcast %c0_i32_167 : i32 to vector<1x5xi32>
    %514 = arith.select %512, %510, %513 : vector<1x5xi1>, vector<1x5xi32>
    %cst_168 = arith.constant dense<0> : vector<1xi32>
    %515 = vector.multi_reduction <add>, %514, %cst_168 [1] : vector<1x5xi32> to vector<1xi32>
    %516 = vector.shape_cast %515 : vector<1xi32> to vector<1x1xi32>
    %517 = vector.broadcast %507 : i32 to vector<1x8xi32>
    %518 = arith.cmpi eq, %440, %517 : vector<1x8xi32>
    %519 = vector.shape_cast %516 : vector<1x1xi32> to vector<1x1xi32>
    %520 = vector.broadcast %519 : vector<1x1xi32> to vector<1x8xi32>
    %521 = arith.select %518, %520, %506 : vector<1x8xi1>, vector<1x8xi32>
    %c5_i32_169 = arith.constant 5 : i32
    %c6_i32_170 = arith.constant 6 : i32
    %522 = arith.subi %c6_i32_170, %c5_i32_169 : i32
    %c1_i32_171 = arith.constant 1 : i32
    %523 = arith.addi %522, %c1_i32_171 : i32
    %524 = arith.index_cast %523 : i32 to index
    %c0_172 = arith.constant 0 : index
    %525 = vector.load %arg6[%524, %c0_172] : memref<8x5xi32, #tpu.memory_space<vmem>>, vector<1x5xi32>
    %526 = vector.broadcast %516 : vector<1x1xi32> to vector<1x5xi32>
    %527 = arith.cmpi eq, %237, %526 : vector<1x5xi32>
    %c0_i32_173 = arith.constant 0 : i32
    %528 = vector.broadcast %c0_i32_173 : i32 to vector<1x5xi32>
    %529 = arith.select %527, %525, %528 : vector<1x5xi1>, vector<1x5xi32>
    %cst_174 = arith.constant dense<0> : vector<1xi32>
    %530 = vector.multi_reduction <add>, %529, %cst_174 [1] : vector<1x5xi32> to vector<1xi32>
    %531 = vector.shape_cast %530 : vector<1xi32> to vector<1x1xi32>
    %532 = vector.broadcast %522 : i32 to vector<1x8xi32>
    %533 = arith.cmpi eq, %440, %532 : vector<1x8xi32>
    %534 = vector.shape_cast %531 : vector<1x1xi32> to vector<1x1xi32>
    %535 = vector.broadcast %534 : vector<1x1xi32> to vector<1x8xi32>
    %536 = arith.select %533, %535, %521 : vector<1x8xi1>, vector<1x8xi32>
    %c6_i32_175 = arith.constant 6 : i32
    %c6_i32_176 = arith.constant 6 : i32
    %537 = arith.subi %c6_i32_176, %c6_i32_175 : i32
    %c1_i32_177 = arith.constant 1 : i32
    %538 = arith.addi %537, %c1_i32_177 : i32
    %539 = arith.index_cast %538 : i32 to index
    %c0_178 = arith.constant 0 : index
    %540 = vector.load %arg6[%539, %c0_178] : memref<8x5xi32, #tpu.memory_space<vmem>>, vector<1x5xi32>
    %541 = vector.broadcast %531 : vector<1x1xi32> to vector<1x5xi32>
    %542 = arith.cmpi eq, %237, %541 : vector<1x5xi32>
    %c0_i32_179 = arith.constant 0 : i32
    %543 = vector.broadcast %c0_i32_179 : i32 to vector<1x5xi32>
    %544 = arith.select %542, %540, %543 : vector<1x5xi1>, vector<1x5xi32>
    %cst_180 = arith.constant dense<0> : vector<1xi32>
    %545 = vector.multi_reduction <add>, %544, %cst_180 [1] : vector<1x5xi32> to vector<1xi32>
    %546 = vector.shape_cast %545 : vector<1xi32> to vector<1x1xi32>
    %547 = vector.broadcast %537 : i32 to vector<1x8xi32>
    %548 = arith.cmpi eq, %440, %547 : vector<1x8xi32>
    %549 = vector.shape_cast %546 : vector<1x1xi32> to vector<1x1xi32>
    %550 = vector.broadcast %549 : vector<1x1xi32> to vector<1x8xi32>
    %551 = arith.select %548, %550, %536 : vector<1x8xi1>, vector<1x8xi32>
    %c7_i32_181 = arith.constant 7 : i32
    %cst_182 = arith.constant 0.000000e+00 : f32
    %552 = vector.broadcast %cst_182 : f32 to vector<1x128xf32>
    %c0_183 = arith.constant 0 : index
    %c0_184 = arith.constant 0 : index
    %553 = vector.load %arg2[%c0_183, %c0_184] : memref<1x128xf32, #tpu.memory_space<vmem>>, vector<1x128xf32>
    tpu.vector_store %arg2[%c0_183, %c0_184], %552 {strides = array<i32>} : memref<1x128xf32, #tpu.memory_space<vmem>>, vector<1x128xf32>,
    %554 = arith.sitofp %551 : vector<1x8xi32> to vector<1x8xf32>
    %c0_185 = arith.constant 0 : index
    %c0_186 = arith.constant 0 : index
    %555 = vector.load %arg2[%c0_185, %c0_186] : memref<1x128xf32, #tpu.memory_space<vmem>>, vector<1x8xf32>
    tpu.vector_store %arg2[%c0_185, %c0_186], %554 {strides = array<i32>} : memref<1x128xf32, #tpu.memory_space<vmem>>, vector<1x8xf32>,
    %c0_187 = arith.constant 0 : index
    %c8 = arith.constant 8 : index
    %556 = vector.load %arg2[%c0_187, %c8] : memref<1x128xf32, #tpu.memory_space<vmem>>, vector<1x1xf32>
    tpu.vector_store %arg2[%c0_187, %c8], %431 {strides = array<i32>} : memref<1x128xf32, #tpu.memory_space<vmem>>, vector<1x1xf32>,
    return
  }
}

</mosaic_0001>

<bundles_post_ra>
// kernel: reverse
= control target key start
LH: loop header
LB: loop body
LE: loop exit
PB: predicated region body
PF: predicated region fallthrough
CT: control target
= control target key end

     0   :  { %v2_v0 = vlaneseq  ;;  %s130_s0 = inlined_call_operand.vmem [shape: s32[8], index: 0, kind: input, shape index: {}]   ;;  %s131_s1 = inlined_call_operand.vmem [shape: s32[8], index: 1, kind: output, shape index: {}]  }
   0x2   :  { %v3_v1 = vsub.s32 7, %v2_v0 }
   0x4   :  { %4 = vset.pattern.permute.xlu0 %v3_v1 }
   0x5   :  { %v46_v2 = vld [vmem:[#allocation1] sm:$0x1]  ;;  %v22_v3 = vld [vmem:[%s130_s0] sm:$0x1]  ;;  %v61_v10 = vshrl.u32 %v2_v0, 7 }
   0x6   :  { %47 = vst [vmem:[#allocation0] sm:$0x1] %v46_v2  ;;  %23 = vst [vmem:[#allocation1 + $0x1] sm:$0x1] %v22_v3 }
   0x7   :  { %vm62_vm0 = vcmp.lt.s32.totalorder %v61_v10, 1 }
   0xd   :  { %v49_v4 = vld [vmem:[#allocation0 + $0x7] ss:$-1 sm:$0xff]  ;;  %v43_v5 = vld [vmem:[#allocation1 + $0x1] sm:$0x1] }
   0xe   :  { %v50_v6 = vrot.slane %v49_v4, 7  ;;  %45 = vst [vmem:[#allocation0 + $0x8] sm:$0x1] %v43_v5 }
  0x10   :  { %51 = vperm.xlu0 %4, %v50_v6  }
  0x15   :  { %v56_v7 = vld [vmem:[#allocation0 + $0xf] ss:$-1 sm:$0xff] }
  0x16   :  { %v57_v8 = vrot.slane %v56_v7, 7 }
  0x18   :  { %58 = vperm.xlu0 %4, %v57_v8  }
  0x8b   :  { %v52_v9 = vpop.permute.xlu0 %51 }
  0x8c   :  { %53 = vst [vmem:[#allocation2] sm:$0xff] %v52_v9 }
  0x93   :  { %v59_v11 = vpop.permute.xlu0 %58 }
  0x94   :  { %63 = vst.msk [vmem:[#allocation2] sm:$0xff] %vm62_vm0, %v59_v11 }
  0x9b   :  { %v68_v12 = vld [vmem:[#allocation2] sm:$0x1] }
  0x9c   :  { %71 = vst [vmem:[#allocation3] sm:$0x1] %v68_v12 }
  0xa3   :  { %v88_v13 = vld [vmem:[#allocation3] sm:$0x1] }
  0xa4   :  { %89 = vst [vmem:[%s131_s1] sm:$0x1] %v88_v13 }

// kernel: bilstm_crf_forward.1
= control target key start
LH: loop header
LB: loop body
LE: loop exit
PB: predicated region body
PF: predicated region fallthrough
CT: control target
= control target key end

     0   :  { %7 = vsyncpa [#allocation7], 0  ;;  %s1701_s9 = smov [#allocation6]   ;;  %s2031_s0 = inlined_call_operand.vmem [shape: s32[8,2], index: 0, kind: input, shape index: {}]   ;;  %s2032_s1 = inlined_call_operand.hbm [shape: f32[128,128], index: 1, kind: input, shape index: {}]   ;;  %s2033_s2 = inlined_call_operand.vmem [shape: f32[1,128], index: 2, kind: output, shape index: {}]  }
   0x1   :  { %s15_s10 = sshll.u32 %s1701_s9, 4  ;;  %s16_s10 = int_to_ptr.vmem [resolvable:$true] %s15_s10 }
   0x2   :  { %s1687_s11 = scalar_lea.vmem %s16_s10, 2048  ;;  %p1692_p1 = scmp.lt.s32.totalorder %s16_s10, %s16_s10 }
   0x3   :  { %p1688_p0 = scmp.ne.s32.totalorder %s16_s10, %s1687_s11  ;;  %p1693_p2 = scmp.lt.s32.totalorder %s1687_s11, %s1687_s11 }
   0x5   :  { %p1694_p3 = por %p1693_p2, %p1692_p1 }
   0x7   :  { %p1695_p4 = pnand %p1694_p3, %p1688_p0 }
   0x9   :  { %1698 = shalt.err (!%p1695_p4)
}
   0xa   :  { %s1702_s12 = smov 128   ;;  %s1703_s13 = smov 8  }
   0xb   :  { %21 = dma.hbm_to_vmem [thread:$0]  %s2032_s1, 2048, %s16_s10, [#allocation7], %s1702_s12, %s1702_s12, %s1703_s13  }
   0xc   :  { %1699 = dma.done.wait [#allocation7], 2048  }
   0xd   :  { %1700 = vsyncadd [#allocation7], 4294965248  ;;  %v1704_v0 = vmov 0   ;;  %v1705_v1 = vmov 0.0   ;;  %v25_v2 = vld [vmem:[%s2031_s0] sm:$0xff]  ;;  %v48_v3 = vld [vmem:[#allocation6 + $0x28] sm:$0xff]  ;;  %v26_v16 = vlaneseq }
   0xe   :  { %1643 = vset.pattern.permute.xlu0 %v1704_v0  ;;  %1498 = vmatprep.subr.mxu0 %v1705_v1  ;;  %1412 = vst [vmem:[%s2033_s2] sm:$0x1] %v1705_v1  ;;  %v47_v4 = vld [vmem:[#allocation6 + $0x20] sm:$0xff]  ;;  %v33_v5 = vadd.s32 20, %v25_v2  ;;  %v46_v6 = vld [vmem:[#allocation6 + $0x18] sm:$0xff]  ;;  %v45_v7 = vld [vmem:[#allocation6 + $0x10] sm:$0xff]  ;;  %v1706_v8 = vmov 1  }
   0xf   :  { %1513 = vmatprep.subr.mxu1 %v1705_v1  ;;  %29 = vperm.xlu0 %1643, %v25_v2   ;;  %v44_v9 = vld [vmem:[#allocation6 + $0x8] sm:$0xff]  ;;  %vm1707_vm0 = vmmov 0   ;;  %v43_v11 = vld [vmem:[#allocation6] sm:$0xff]  ;;  %v1753_v13 = vld [vmem:[#allocation6 + $0x38] sm:$0xff]  ;;  %vm136_vm1 = vcmask 261120   ;;  %v1779_v17 = vand.u32 127, %v26_v16 }
  0x10   :  { %1499 = vmatpush3.msra.mxu0 %v48_v3  ;;  %v1744_v10 = vld [vmem:[#allocation6 + $0x48] sm:$0xff]  ;;  %1510 = vmatprep.mubr.msk.f32.mxu0 %vm1707_vm0, %v1705_v1  ;;  %v1750_v12 = vld [vmem:[#allocation6 + $0x40] sm:$0xff]  ;;  %v1758_v14 = vld [vmem:[#allocation6 + $0x30] sm:$0xff]  ;;  %vm49_vm5 = vcmask 392192   ;;  %v1708_v31 = vmov 0.5   ;;  %s1709_s0 = smov 64  }
  0x11   :  { %1500 = vmatprep.subr.mxu0 %v1705_v1  ;;  %1514 = vmatpush3.msra.mxu1 %v1744_v10  ;;  %v128_v15 = vld [vmem:[#allocation6 + $0x50] sm:$0x1]  ;;  %vm40_vm3 = vcmp.eq.s32.totalorder %v1779_v17, 40  ;;  %vm130_vm6 = vcmp.ge.s32.totalorder %v1779_v17, 64  ;;  %vm131_vm7 = vcmp.lt.s32.totalorder %v1779_v17, 96  ;;  %s1710_s1 = smov 32  }
  0x12   :  { %1501 = vmatpush3.msra.mxu0 %v47_v4  ;;  %1515 = vmatprep.subr.mxu1 %v1705_v1  ;;  %v41_v21 = vsel %vm40_vm3, 1.0, %v1705_v1  ;;  %vm132_vm8 = vmand %vm130_vm6, %vm131_vm7  ;;  %v129_v37 = vld [vmem:[#allocation6 + $0x51] sm:$0x1]  ;;  %vm238_vm9 = vcmask 122880   ;;  %vm240_vm10 = vcmask 254080   ;;  %vm1019_vm11 = vcmask 39936  }
  0x13   :  { %1502 = vmatprep.subr.mxu0 %v1705_v1  ;;  %1644 = vset.pattern.permute.xlu0 %v1706_v8  ;;  %v1799_v32 = vsel %vm132_vm8, 1.0, %v1708_v31  ;;  %v1801_v34 = vsel %vm132_vm8, 0.0, %v1708_v31  ;;  %vm1035_vm13 = vcmask 36864   ;;  %vm1053_vm15 = vcmask 32768   ;;  %s1713_s20 = smov 4  }
  0x14   :  { %1503 = vmatpush3.msra.mxu0 %v46_v6  ;;  %35 = vperm.xlu0 %1644, %v33_v5   ;;  %vm1263_vm7 = vcmask 36896  }
  0x15   :  { %1504 = vmatprep.subr.mxu0 %v1705_v1  ;;  %1516 = vmatpush3.msra.mxu1 %v1750_v12 }
  0x16   :  { %1505 = vmatpush3.msra.mxu0 %v45_v7  ;;  %1517 = vmatprep.subr.mxu1 %v1705_v1 }
  0x17   :  { %1506 = vmatprep.subr.mxu0 %v1705_v1  ;;  %1518 = vmatpush3.msra.mxu1 %v1753_v13 }
  0x18   :  { %1507 = vmatpush3.msra.mxu0 %v44_v9  ;;  %1521 = vmatprep.mubr.msk.f32.mxu1 %vm1707_vm0, %v1705_v1 }
  0x19   :  { %1508 = vmatprep.subr.mxu0 %v1705_v1  ;;  %1519 = vmatprep.subr.mxu1 %v1705_v1 }
  0x1a   :  { %1509 = vmatpush3.msra.mxu0 %v43_v11  ;;  %1520 = vmatpush3.msra.mxu1 %v1758_v14 }
  0x1b   :  { %1535 = vmatprep.subr.mxu0 %v1705_v1  ;;  %1522 = vmatmul.mubr.msk.f32.vlgmr.msra.gmra.mxu1 %vm136_vm1, %v128_v15 }
  0x1c   :  { %1524 = vmatprep.subr.mxu1 %v1705_v1  ;;  %1532 = vmatprep.mubr.msk.f32.mxu1 %vm1707_vm0, %v1705_v1 }
  0x1d   :  { %1525 = vmatpush3.msra.mxu1 %v1744_v10 }
  0x1e   :  { %1526 = vmatprep.subr.mxu1 %v1705_v1 }
  0x1f   :  { %1527 = vmatpush3.msra.mxu1 %v1750_v12 }
  0x20   :  { %1528 = vmatprep.subr.mxu1 %v1705_v1 }
  0x21   :  { %1529 = vmatpush3.msra.mxu1 %v1753_v13 }
  0x22   :  { %1530 = vmatprep.subr.mxu1 %v1705_v1 }
  0x23   :  { %1531 = vmatpush3.msra.mxu1 %v1758_v14 }
  0x24   :  { %1546 = vmatprep.subr.mxu1 %v1705_v1 }
  0x8a   :  { %v30_v18 = vpop.permute.xlu0 %29 }
  0x8b   :  { %vm31_vm2 = vcmp.eq.s32.totalorder %v1779_v17, %v30_v18 }
  0x8c   :  { %v32_v20 = vsel %vm31_vm2, 1.0, %v1705_v1 }
  0x8f   :  { %v36_v19 = vpop.permute.xlu0 %35 }
  0x90   :  { %vm37_vm4 = vcmp.eq.s32.totalorder %v1779_v17, %v36_v19 }
  0x91   :  { %v38_v22 = vsel %vm37_vm4, 1.0, %v1705_v1 }
  0x92   :  { %v39_v23 = vadd.f32 %v38_v22, %v32_v20 }
  0x94   :  { %v42_v24 = vadd.f32 %v41_v21, %v39_v23 }
  0x96   :  { %1511 = vmatmul.mubr.msk.f32.vlgmr.msra.gmra.mxu0 %vm49_vm5, %v42_v24 }
  0x97   :  { %1536 = vmatpush3.msra.mxu0 %v1744_v10  ;;  %1543 = vmatprep.mubr.msk.f32.mxu0 %vm1707_vm0, %v1705_v1 }
  0x98   :  { %1537 = vmatprep.subr.mxu0 %v1705_v1 }
  0x99   :  { %1538 = vmatpush3.msra.mxu0 %v1750_v12 }
  0x9a   :  { %1539 = vmatprep.subr.mxu0 %v1705_v1 }
  0x9b   :  { %1540 = vmatpush3.msra.mxu0 %v1753_v13 }
  0x9c   :  { %1541 = vmatprep.subr.mxu0 %v1705_v1 }
  0x9d   :  { %1542 = vmatpush3.msra.mxu0 %v1758_v14 }
  0x9e   :  { %1557 = vmatprep.subr.mxu0 %v1705_v1 }
  0xdb   :  { %v206_v25 = vpop.f32.mrf.mxu1 }
  0xdd   :  { %v1523_v26 = vpop.f32.mrf.mxu1 }
 0x156   :  { %v119_v27 = vpop.f32.mrf.mxu0 }
 0x157   :  { %123 = vst [vmem:[#allocation2] sm:$0xff] %v119_v27 }
 0x158   :  { %v1512_v28 = vpop.f32.mrf.mxu0 }
 0x15e   :  { %v135_v29 = vld [vmem:[#allocation2] sm:$0x1]  ;;  %v242_v48 = vld [vmem:[#allocation2 + $0x1] sm:$0x1]  ;;  %v341_v0 = vld [vmem:[#allocation2 + $0x2] sm:$0x1] }
 0x15f   :  { %v207_v30 = vadd.f32 %v206_v25, %v135_v29  ;;  %v440_v23 = vld [vmem:[#allocation2 + $0x3] sm:$0x1] }
 0x161   :  { %1647 = vtanh.f32 %v207_v30 }
 0x16e   :  { %v1648_v33 = vpop.eup %1647 }
 0x16f   :  { %v211_v35 = vmul.f32 %v1648_v33, %v1799_v32 }
 0x171   :  { %v212_v36 = vadd.f32 %v211_v35, %v1801_v34 }
 0x173   :  { %219 = vrot.lane.b32.xlu1 %v212_v36, %s1709_s0 }
 0x177   :  { %214 = vrot.lane.b32.xlu1 %v129_v37, %s1710_s1 }
 0x1e5   :  { %v220_v38 = vpop.permute.xlu1 %219 }
 0x1e6   :  { %v222_v39 = vmul.f32 %v220_v38, %v212_v36 }
 0x1e8   :  { %224 = vrot.lane.b32.xlu1 %v222_v39, %s1710_s1 }
 0x1e9   :  { %v215_v40 = vpop.permute.xlu1 %214 }
 0x1ea   :  { %v217_v41 = vmul.f32 %v215_v40, %v212_v36 }
 0x25a   :  { %v225_v42 = vpop.permute.xlu1 %224 }
 0x25b   :  { %v227_v43 = vadd.f32 %v225_v42, %v217_v41  ;;  %v539_v41 = vld [vmem:[#allocation2 + $0x4] sm:$0x1] }
 0x25d   :  { %1649 = vtanh.f32 %v227_v43 }
 0x26a   :  { %v1650_v44 = vpop.eup %1649 }
 0x26b   :  { %230 = vrot.lane.b32.xlu0 %v1650_v44, %s1709_s0 }
 0x2dd   :  { %v231_v45 = vpop.permute.xlu0 %230 }
 0x2de   :  { %v233_v46 = vmul.f32 %v231_v45, %v212_v36 }
 0x2e0   :  { %235 = vrot.lane.b32.xlu1 %v233_v46, %s1710_s1 }
 0x352   :  { %v236_v47 = vpop.permute.xlu1 %235 }
 0x353   :  { %239 = vst.msk [vmem:[#allocation3] sm:$0x1] %vm238_vm9, %v236_v47  ;;  %1533 = vmatmul.mubr.msk.f32.vlgmr.msra.gmra.mxu1 %vm136_vm1, %v236_v47 }
 0x354   :  { %241 = vst.msk [vmem:[#allocation3 + $0x7] sm:$0x1] %vm240_vm10, %v236_v47  ;;  %1547 = vmatpush3.msra.mxu1 %v1744_v10  ;;  %1554 = vmatprep.mubr.msk.f32.mxu1 %vm1707_vm0, %v1705_v1 }
 0x355   :  { %1548 = vmatprep.subr.mxu1 %v1705_v1 }
 0x356   :  { %1549 = vmatpush3.msra.mxu1 %v1750_v12 }
 0x357   :  { %1550 = vmatprep.subr.mxu1 %v1705_v1 }
 0x358   :  { %1551 = vmatpush3.msra.mxu1 %v1753_v13 }
 0x359   :  { %1552 = vmatprep.subr.mxu1 %v1705_v1 }
 0x35a   :  { %1553 = vmatpush3.msra.mxu1 %v1758_v14 }
 0x35b   :  { %1568 = vmatprep.subr.mxu1 %v1705_v1 }
 0x413   :  { %v311_v49 = vpop.f32.mrf.mxu1 }
 0x414   :  { %v312_v50 = vadd.f32 %v311_v49, %v242_v48 }
 0x415   :  { %v1534_v51 = vpop.f32.mrf.mxu1 }
 0x416   :  { %1651 = vtanh.f32 %v312_v50 }
 0x423   :  { %v1652_v52 = vpop.eup %1651 }
 0x424   :  { %v316_v53 = vmul.f32 %v1652_v52, %v1799_v32 }
 0x426   :  { %v317_v54 = vadd.f32 %v316_v53, %v1801_v34 }
 0x428   :  { %320 = vrot.lane.b32.xlu0 %v317_v54, %s1709_s0  ;;  %v318_v57 = vmul.f32 %v317_v54, %v227_v43 }
 0x49a   :  { %v321_v55 = vpop.permute.xlu0 %320 }
 0x49b   :  { %v323_v56 = vmul.f32 %v321_v55, %v317_v54 }
 0x49d   :  { %325 = vrot.lane.b32.xlu1 %v323_v56, %s1710_s1 }
 0x50f   :  { %v326_v58 = vpop.permute.xlu1 %325 }
 0x510   :  { %v328_v59 = vadd.f32 %v326_v58, %v318_v57  ;;  %v638_v57 = vld [vmem:[#allocation2 + $0x5] sm:$0x1] }
 0x512   :  { %1653 = vtanh.f32 %v328_v59 }
 0x51f   :  { %v1654_v60 = vpop.eup %1653 }
 0x520   :  { %331 = vrot.lane.b32.xlu0 %v1654_v60, %s1709_s0 }
 0x592   :  { %v332_v61 = vpop.permute.xlu0 %331 }
 0x593   :  { %v334_v62 = vmul.f32 %v332_v61, %v317_v54 }
 0x595   :  { %336 = vrot.lane.b32.xlu1 %v334_v62, %s1710_s1 }
 0x607   :  { %v337_v63 = vpop.permute.xlu1 %336 }
 0x608   :  { %339 = vst.msk [vmem:[#allocation3 + $0x1] sm:$0x1] %vm238_vm9, %v337_v63  ;;  %1544 = vmatmul.mubr.msk.f32.vlgmr.msra.gmra.mxu0 %vm136_vm1, %v337_v63 }
 0x609   :  { %340 = vst.msk [vmem:[#allocation3 + $0x6] sm:$0x1] %vm240_vm10, %v337_v63  ;;  %1558 = vmatpush3.msra.mxu0 %v1744_v10  ;;  %1565 = vmatprep.mubr.msk.f32.mxu0 %vm1707_vm0, %v1705_v1 }
 0x60a   :  { %1559 = vmatprep.subr.mxu0 %v1705_v1 }
 0x60b   :  { %1560 = vmatpush3.msra.mxu0 %v1750_v12 }
 0x60c   :  { %1561 = vmatprep.subr.mxu0 %v1705_v1 }
 0x60d   :  { %1562 = vmatpush3.msra.mxu0 %v1753_v13 }
 0x60e   :  { %1563 = vmatprep.subr.mxu0 %v1705_v1 }
 0x60f   :  { %1564 = vmatpush3.msra.mxu0 %v1758_v14 }
 0x610   :  { %1579 = vmatprep.subr.mxu0 %v1705_v1 }
 0x6c8   :  { %v410_v2 = vpop.f32.mrf.mxu0 }
 0x6c9   :  { %v411_v3 = vadd.f32 %v410_v2, %v341_v0 }
 0x6ca   :  { %v1545_v4 = vpop.f32.mrf.mxu0 }
 0x6cb   :  { %1655 = vtanh.f32 %v411_v3 }
 0x6d8   :  { %v1656_v5 = vpop.eup %1655 }
 0x6d9   :  { %v415_v6 = vmul.f32 %v1656_v5, %v1799_v32 }
 0x6db   :  { %v416_v7 = vadd.f32 %v415_v6, %v1801_v34  ;;  %v737_v6 = vld [vmem:[#allocation2 + $0x6] sm:$0x1] }
 0x6dd   :  { %419 = vrot.lane.b32.xlu0 %v416_v7, %s1709_s0  ;;  %v417_v11 = vmul.f32 %v416_v7, %v328_v59 }
 0x74f   :  { %v420_v8 = vpop.permute.xlu0 %419 }
 0x750   :  { %v422_v9 = vmul.f32 %v420_v8, %v416_v7 }
 0x752   :  { %424 = vrot.lane.b32.xlu1 %v422_v9, %s1710_s1 }
 0x7c4   :  { %v425_v15 = vpop.permute.xlu1 %424 }
 0x7c5   :  { %v427_v18 = vadd.f32 %v425_v15, %v417_v11 }
 0x7c7   :  { %1657 = vtanh.f32 %v427_v18 }
 0x7d4   :  { %v1658_v19 = vpop.eup %1657 }
 0x7d5   :  { %430 = vrot.lane.b32.xlu0 %v1658_v19, %s1709_s0 }
 0x847   :  { %v431_v20 = vpop.permute.xlu0 %430 }
 0x848   :  { %v433_v21 = vmul.f32 %v431_v20, %v416_v7 }
 0x84a   :  { %435 = vrot.lane.b32.xlu1 %v433_v21, %s1710_s1 }
 0x8bc   :  { %v436_v22 = vpop.permute.xlu1 %435 }
 0x8bd   :  { %438 = vst.msk [vmem:[#allocation3 + $0x2] sm:$0x1] %vm238_vm9, %v436_v22  ;;  %1555 = vmatmul.mubr.msk.f32.vlgmr.msra.gmra.mxu1 %vm136_vm1, %v436_v22 }
 0x8be   :  { %439 = vst.msk [vmem:[#allocation3 + $0x5] sm:$0x1] %vm240_vm10, %v436_v22  ;;  %1569 = vmatpush3.msra.mxu1 %v1744_v10  ;;  %1576 = vmatprep.mubr.msk.f32.mxu1 %vm1707_vm0, %v1705_v1 }
 0x8bf   :  { %1570 = vmatprep.subr.mxu1 %v1705_v1 }
 0x8c0   :  { %1571 = vmatpush3.msra.mxu1 %v1750_v12 }
 0x8c1   :  { %1572 = vmatprep.subr.mxu1 %v1705_v1 }
 0x8c2   :  { %1573 = vmatpush3.msra.mxu1 %v1753_v13 }
 0x8c3   :  { %1574 = vmatprep.subr.mxu1 %v1705_v1 }
 0x8c4   :  { %1575 = vmatpush3.msra.mxu1 %v1758_v14 }
 0x8c5   :  { %1590 = vmatprep.subr.mxu1 %v1705_v1 }
 0x97d   :  { %v509_v24 = vpop.f32.mrf.mxu1 }
 0x97e   :  { %v510_v25 = vadd.f32 %v509_v24, %v440_v23 }
 0x97f   :  { %v1556_v26 = vpop.f32.mrf.mxu1 }
 0x980   :  { %1659 = vtanh.f32 %v510_v25 }
 0x98d   :  { %v1660_v27 = vpop.eup %1659 }
 0x98e   :  { %v514_v28 = vmul.f32 %v1660_v27, %v1799_v32 }
 0x990   :  { %v515_v29 = vadd.f32 %v514_v28, %v1801_v34  ;;  %v836_v28 = vld [vmem:[#allocation2 + $0x7] sm:$0x1] }
 0x992   :  { %518 = vrot.lane.b32.xlu0 %v515_v29, %s1709_s0  ;;  %v516_v33 = vmul.f32 %v515_v29, %v427_v18 }
 0xa04   :  { %v519_v30 = vpop.permute.xlu0 %518 }
 0xa05   :  { %v521_v31 = vmul.f32 %v519_v30, %v515_v29 }
 0xa07   :  { %523 = vrot.lane.b32.xlu1 %v521_v31, %s1710_s1 }
 0xa79   :  { %v524_v35 = vpop.permute.xlu1 %523 }
 0xa7a   :  { %v526_v36 = vadd.f32 %v524_v35, %v516_v33 }
 0xa7c   :  { %1661 = vtanh.f32 %v526_v36 }
 0xa89   :  { %v1662_v37 = vpop.eup %1661 }
 0xa8a   :  { %529 = vrot.lane.b32.xlu0 %v1662_v37, %s1709_s0 }
 0xafc   :  { %v530_v38 = vpop.permute.xlu0 %529 }
 0xafd   :  { %v532_v39 = vmul.f32 %v530_v38, %v515_v29 }
 0xaff   :  { %534 = vrot.lane.b32.xlu1 %v532_v39, %s1710_s1 }
 0xb71   :  { %v535_v40 = vpop.permute.xlu1 %534 }
 0xb72   :  { %537 = vst.msk [vmem:[#allocation3 + $0x3] sm:$0x1] %vm238_vm9, %v535_v40  ;;  %1566 = vmatmul.mubr.msk.f32.vlgmr.msra.gmra.mxu0 %vm136_vm1, %v535_v40 }
 0xb73   :  { %538 = vst.msk [vmem:[#allocation3 + $0x4] sm:$0x1] %vm240_vm10, %v535_v40  ;;  %1580 = vmatpush3.msra.mxu0 %v1744_v10  ;;  %1587 = vmatprep.mubr.msk.f32.mxu0 %vm1707_vm0, %v1705_v1 }
 0xb74   :  { %1581 = vmatprep.subr.mxu0 %v1705_v1 }
 0xb75   :  { %1582 = vmatpush3.msra.mxu0 %v1750_v12 }
 0xb76   :  { %1583 = vmatprep.subr.mxu0 %v1705_v1 }
 0xb77   :  { %1584 = vmatpush3.msra.mxu0 %v1753_v13 }
 0xb78   :  { %1585 = vmatprep.subr.mxu0 %v1705_v1 }
 0xb79   :  { %1586 = vmatpush3.msra.mxu0 %v1758_v14 }
 0xb7a   :  { %1601 = vmatprep.subr.mxu0 %v1705_v1 }
 0xc32   :  { %v608_v42 = vpop.f32.mrf.mxu0 }
 0xc33   :  { %v609_v43 = vadd.f32 %v608_v42, %v539_v41 }
 0xc34   :  { %v1567_v44 = vpop.f32.mrf.mxu0 }
 0xc35   :  { %1663 = vtanh.f32 %v609_v43  ;;  %v938_v43 = vld [vmem:[#allocation6 + $0x70] sm:$0xff]  ;;  %v937_v44 = vld [vmem:[#allocation6 + $0x68] sm:$0xff] }
 0xc42   :  { %v1664_v45 = vpop.eup %1663 }
 0xc43   :  { %v613_v46 = vmul.f32 %v1664_v45, %v1799_v32 }
 0xc45   :  { %v614_v47 = vadd.f32 %v613_v46, %v1801_v34 }
 0xc47   :  { %617 = vrot.lane.b32.xlu0 %v614_v47, %s1709_s0  ;;  %v615_v50 = vmul.f32 %v614_v47, %v526_v36 }
 0xcb9   :  { %v618_v48 = vpop.permute.xlu0 %617 }
 0xcba   :  { %v620_v49 = vmul.f32 %v618_v48, %v614_v47 }
 0xcbc   :  { %622 = vrot.lane.b32.xlu1 %v620_v49, %s1710_s1  ;;  %v1023_v49 = vshrl.u32 %v26_v16, 7 }
 0xcbe   :  { %vm1026_vm12 = vcmp.eq.s32.totalorder %v1023_v49, 3  ;;  %vm1936_vm14 = vcmp.eq.s32.totalorder %v1023_v49, %v1779_v17 }
 0xd2e   :  { %v623_v51 = vpop.permute.xlu1 %622 }
 0xd2f   :  { %v625_v52 = vadd.f32 %v623_v51, %v615_v50  ;;  %v1437_v50 = vld [vmem:[#allocation6 + $0x7d] ss:$0 sm:$0xff] }
 0xd31   :  { %1665 = vtanh.f32 %v625_v52 }
 0xd3e   :  { %v1666_v53 = vpop.eup %1665 }
 0xd3f   :  { %628 = vrot.lane.b32.xlu0 %v1666_v53, %s1709_s0  ;;  %v1931_v53 = vld [vmem:[#allocation6 + $0x78] sm:$0x1f] }
 0xdb1   :  { %v629_v54 = vpop.permute.xlu0 %628 }
 0xdb2   :  { %v631_v55 = vmul.f32 %v629_v54, %v614_v47  ;;  %v1711_v54 = vmov -10000.0  }
 0xdb4   :  { %633 = vrot.lane.b32.xlu1 %v631_v55, %s1710_s1  ;;  %v1027_v55 = vsel %vm1026_vm12, 0.0, %v1711_v54  ;;  %vm1302_vm12 = vcmp.eq.s32.totalorder %v1779_v17, 6 }
 0xe26   :  { %v634_v56 = vpop.permute.xlu1 %633 }
 0xe27   :  { %636 = vst.msk [vmem:[#allocation3 + $0x4] sm:$0x1] %vm238_vm9, %v634_v56  ;;  %1577 = vmatmul.mubr.msk.f32.vlgmr.msra.gmra.mxu1 %vm136_vm1, %v634_v56 }
 0xe28   :  { %637 = vst.msk [vmem:[#allocation3 + $0x3] sm:$0x1] %vm240_vm10, %v634_v56  ;;  %1591 = vmatpush3.msra.mxu1 %v1744_v10  ;;  %1598 = vmatprep.mubr.msk.f32.mxu1 %vm1707_vm0, %v1705_v1  ;;  %v1028_v56 = vadd.f32 %v1027_v55, %v1931_v53 }
 0xe29   :  { %1592 = vmatprep.subr.mxu1 %v1705_v1 }
 0xe2a   :  { %1593 = vmatpush3.msra.mxu1 %v1750_v12 }
 0xe2b   :  { %1594 = vmatprep.subr.mxu1 %v1705_v1 }
 0xe2c   :  { %1595 = vmatpush3.msra.mxu1 %v1753_v13 }
 0xe2d   :  { %1596 = vmatprep.subr.mxu1 %v1705_v1 }
 0xe2e   :  { %1597 = vmatpush3.msra.mxu1 %v1758_v14 }
 0xee7   :  { %v707_v58 = vpop.f32.mrf.mxu1 }
 0xee8   :  { %v708_v59 = vadd.f32 %v707_v58, %v638_v57 }
 0xee9   :  { %v1578_v60 = vpop.f32.mrf.mxu1 }
 0xeea   :  { %1667 = vtanh.f32 %v708_v59 }
 0xef7   :  { %v1668_v10 = vpop.eup %1667 }
 0xef8   :  { %v712_v61 = vmul.f32 %v1668_v10, %v1799_v32 }
 0xefa   :  { %v713_v62 = vadd.f32 %v712_v61, %v1801_v34 }
 0xefc   :  { %716 = vrot.lane.b32.xlu0 %v713_v62, %s1709_s0  ;;  %v714_v13 = vmul.f32 %v713_v62, %v625_v52 }
 0xf6e   :  { %v717_v12 = vpop.permute.xlu0 %716 }
 0xf6f   :  { %v719_v63 = vmul.f32 %v717_v12, %v713_v62  ;;  %v1712_v12 = vmov 4  }
 0xf70   :  { %1645 = vset.pattern.permute.xlu1 %v1712_v12  ;;  %1646 = vset.pattern.permute.xlu0 %v1712_v12 }
 0xf71   :  { %721 = vrot.lane.b32.xlu1 %v719_v63, %s1710_s1  ;;  %v1940_v63 = vcvt.s32.f32 %v1023_v49 }
 0xfe3   :  { %v722_v0 = vpop.permute.xlu1 %721 }
 0xfe4   :  { %v724_v2 = vadd.f32 %v722_v0, %v714_v13 }
 0xfe6   :  { %1669 = vtanh.f32 %v724_v2 }
 0xff3   :  { %v1670_v14 = vpop.eup %1669 }
 0xff4   :  { %727 = vrot.lane.b32.xlu0 %v1670_v14, %s1709_s0 }
0x1066   :  { %v728_v3 = vpop.permute.xlu0 %727 }
0x1067   :  { %v730_v4 = vmul.f32 %v728_v3, %v713_v62 }
0x1069   :  { %732 = vrot.lane.b32.xlu1 %v730_v4, %s1710_s1 }
0x10db   :  { %v733_v5 = vpop.permute.xlu1 %732 }
0x10dc   :  { %735 = vst.msk [vmem:[#allocation3 + $0x5] sm:$0x1] %vm238_vm9, %v733_v5  ;;  %1588 = vmatmul.mubr.msk.f32.vlgmr.msra.gmra.mxu0 %vm136_vm1, %v733_v5 }
0x10dd   :  { %736 = vst.msk [vmem:[#allocation3 + $0x2] sm:$0x1] %vm240_vm10, %v733_v5  ;;  %1609 = vmatprep.mubr.msk.f32.mxu0 %vm1707_vm0, %v1705_v1  ;;  %1602 = vmatpush3.msra.mxu0 %v938_v43 }
0x10de   :  { %1603 = vmatprep.subr.mxu0 %v1705_v1 }
0x10df   :  { %1604 = vmatpush3.msra.mxu0 %v937_v44 }
0x10e0   :  { %1605 = vmatprep.subr.mxu0 %v1705_v1 }
0x119c   :  { %v806_v7 = vpop.f32.mrf.mxu0 }
0x119d   :  { %v807_v8 = vadd.f32 %v806_v7, %v737_v6 }
0x119e   :  { %v1589_v9 = vpop.f32.mrf.mxu0 }
0x119f   :  { %1671 = vtanh.f32 %v807_v8 }
0x11ac   :  { %v1672_v11 = vpop.eup %1671 }
0x11ad   :  { %v811_v15 = vmul.f32 %v1672_v11, %v1799_v32 }
0x11af   :  { %v812_v18 = vadd.f32 %v811_v15, %v1801_v34 }
0x11b1   :  { %815 = vrot.lane.b32.xlu0 %v812_v18, %s1709_s0  ;;  %v813_v21 = vmul.f32 %v812_v18, %v724_v2 }
0x1223   :  { %v816_v19 = vpop.permute.xlu0 %815 }
0x1224   :  { %v818_v20 = vmul.f32 %v816_v19, %v812_v18 }
0x1226   :  { %820 = vrot.lane.b32.xlu1 %v818_v20, %s1710_s1 }
0x1298   :  { %v821_v22 = vpop.permute.xlu1 %820 }
0x1299   :  { %v823_v23 = vadd.f32 %v821_v22, %v813_v21 }
0x129b   :  { %1673 = vtanh.f32 %v823_v23 }
0x12a8   :  { %v1674_v24 = vpop.eup %1673 }
0x12a9   :  { %826 = vrot.lane.b32.xlu0 %v1674_v24, %s1709_s0 }
0x131b   :  { %v827_v25 = vpop.permute.xlu0 %826 }
0x131c   :  { %v829_v26 = vmul.f32 %v827_v25, %v812_v18 }
0x131e   :  { %831 = vrot.lane.b32.xlu1 %v829_v26, %s1710_s1 }
0x1390   :  { %v832_v27 = vpop.permute.xlu1 %831 }
0x1391   :  { %834 = vst.msk [vmem:[#allocation3 + $0x6] sm:$0x1] %vm238_vm9, %v832_v27  ;;  %1599 = vmatmul.mubr.msk.f32.vlgmr.msra.gmra.mxu1 %vm136_vm1, %v832_v27 }
0x1392   :  { %835 = vst.msk [vmem:[#allocation3 + $0x1] sm:$0x1] %vm240_vm10, %v832_v27 }
0x1451   :  { %v905_v29 = vpop.f32.mrf.mxu1 }
0x1452   :  { %v906_v30 = vadd.f32 %v905_v29, %v836_v28 }
0x1453   :  { %v1600_v31 = vpop.f32.mrf.mxu1 }
0x1454   :  { %1675 = vtanh.f32 %v906_v30 }
0x1461   :  { %v1676_v33 = vpop.eup %1675 }
0x1462   :  { %v910_v35 = vmul.f32 %v1676_v33, %v1799_v32  ;;  %v936_v32 = vld [vmem:[#allocation6 + $0x60] sm:$0xff] }
0x1463   :  { %1606 = vmatpush3.msra.mxu0 %v936_v32 }
0x1464   :  { %v911_v36 = vadd.f32 %v910_v35, %v1801_v34  ;;  %v935_v34 = vld [vmem:[#allocation6 + $0x58] sm:$0xff]  ;;  %1607 = vmatprep.subr.mxu0 %v1705_v1 }
0x1465   :  { %1608 = vmatpush3.msra.mxu0 %v935_v34 }
0x1466   :  { %914 = vrot.lane.b32.xlu0 %v911_v36, %s1709_s0  ;;  %v912_v39 = vmul.f32 %v911_v36, %v823_v23 }
0x14d8   :  { %v915_v37 = vpop.permute.xlu0 %914 }
0x14d9   :  { %v917_v38 = vmul.f32 %v915_v37, %v911_v36 }
0x14db   :  { %919 = vrot.lane.b32.xlu1 %v917_v38, %s1710_s1 }
0x154d   :  { %v920_v40 = vpop.permute.xlu1 %919 }
0x154e   :  { %v922_v41 = vadd.f32 %v920_v40, %v912_v39 }
0x1550   :  { %1677 = vtanh.f32 %v922_v41 }
0x155d   :  { %v1678_v42 = vpop.eup %1677 }
0x155e   :  { %925 = vrot.lane.b32.xlu0 %v1678_v42, %s1709_s0 }
0x15d0   :  { %v926_v45 = vpop.permute.xlu0 %925 }
0x15d1   :  { %v928_v46 = vmul.f32 %v926_v45, %v911_v36 }
0x15d3   :  { %930 = vrot.lane.b32.xlu1 %v928_v46, %s1710_s1 }
0x1645   :  { %v931_v47 = vpop.permute.xlu1 %930 }
0x1646   :  { %933 = vst.msk [vmem:[#allocation3 + $0x7] sm:$0x1] %vm238_vm9, %v931_v47 }
0x1647   :  { %934 = vst.msk [vmem:[#allocation3] sm:$0x1] %vm240_vm10, %v931_v47 }
0x164e   :  { %v940_v48 = vld [vmem:[#allocation3] sm:$0xff] }
0x164f   :  { %1610 = vmatmul.mubr.msk.f32.vlgmr.msra.gmra.mxu0 %vm136_vm1, %v940_v48 }
0x170f   :  { %v1010_v51 = vpop.f32.mrf.mxu0 }
0x1710   :  { %v1018_v52 = vadd.f32 %v1437_v50, %v1010_v51 }
0x1711   :  { %v1611_v1 = vpop.f32.mrf.mxu0 }
0x1712   :  { %1020 = vst.msk [vmem:[#allocation4] sm:$0xff] %vm1019_vm11, %v1018_v52  ;;  %vm1281_vm11 = vcmp.eq.s32.totalorder %v1779_v17, 7 }
0x1719   :  { %v1438_v57 = vld [vmem:[#allocation4] ss:$0 sm:$0xff]  ;;  %v1439_v4 = vld [vmem:[#allocation4 + $0x1] ss:$0 sm:$0xff]  ;;  %v1440_v35 = vld [vmem:[#allocation4 + $0x2] ss:$0 sm:$0xff] }
0x171a   :  { %v1034_v58 = vadd.f32 %v1438_v57, %v1028_v56  ;;  %v1441_v56 = vld [vmem:[#allocation4 + $0x3] ss:$0 sm:$0xff] }
0x171c   :  { %v1036_v59 = vsel %vm1035_vm13, %v1034_v58, -inf }
0x171d   :  { %v1037_v60 = vrot.slane %v1036_v59, 4 }
0x171f   :  { %v1038_v16 = vmax.f32 %v1036_v59, %v1037_v60 }
0x1721   :  { %v1039_v10 = vrot.slane %v1038_v16, 2 }
0x1723   :  { %v1040_v61 = vmax.f32 %v1038_v16, %v1039_v10 }
0x1725   :  { %v1041_v62 = vrot.slane %v1040_v61, 1 }
0x1727   :  { %v1042_v13 = vmax.f32 %v1040_v61, %v1041_v62 }
0x1729   :  { %v1055_v0 = vsel %vm1936_vm14, %v1042_v13, -1e+30 }
0x172a   :  { %v1056_v2 = vsel %vm1035_vm13, %v1055_v0, -inf }
0x172b   :  { %1057 = vmax.xlane.f32.xlu0 %v1056_v2 }
0x17b4   :  { %v1058_v14 = vpop.xlane.xlu0 %1057 }
0x17b5   :  { %v1059_v3 = vadd.f32 %v1058_v14, %v1931_v53 }
0x17b7   :  { %v1065_v5 = vadd.f32 %v1439_v4, %v1059_v3 }
0x17b9   :  { %v1066_v6 = vsel %vm1035_vm13, %v1065_v5, -inf }
0x17ba   :  { %v1067_v7 = vrot.slane %v1066_v6, 4 }
0x17bc   :  { %v1068_v8 = vmax.f32 %v1066_v6, %v1067_v7 }
0x17be   :  { %v1069_v9 = vrot.slane %v1068_v8, 2 }
0x17c0   :  { %v1070_v11 = vmax.f32 %v1068_v8, %v1069_v9 }
0x17c2   :  { %v1071_v15 = vrot.slane %v1070_v11, 1 }
0x17c4   :  { %v1072_v18 = vmax.f32 %v1070_v11, %v1071_v15 }
0x17c6   :  { %v1084_v19 = vsel %vm1936_vm14, %v1072_v18, -1e+30  ;;  %vm1073_vm0 = vcmp.ge.f32.partialorder %v1065_v5, %v1072_v18 }
0x17c7   :  { %v1085_v20 = vsel %vm1035_vm13, %v1084_v19, -inf  ;;  %v1074_v21 = vsel %vm1073_vm0, %v1940_v63, 5.0  ;;  %v1442_v19 = vld [vmem:[#allocation4 + $0x4] ss:$0 sm:$0xff]  ;;  %vm1338_vm0 = vcmp.eq.s32.totalorder %v1779_v17, 4 }
0x17c8   :  { %1086 = vmax.xlane.f32.xlu1 %v1085_v20  ;;  %v1075_v22 = vsel %vm1035_vm13, %v1074_v21, inf }
0x17c9   :  { %v1076_v23 = vrot.slane %v1075_v22, 4 }
0x17cb   :  { %v1077_v24 = vmin.f32 %v1075_v22, %v1076_v23 }
0x17cd   :  { %v1078_v25 = vrot.slane %v1077_v24, 2 }
0x17cf   :  { %v1079_v26 = vmin.f32 %v1077_v24, %v1078_v25 }
0x17d1   :  { %v1080_v27 = vrot.slane %v1079_v26, 1 }
0x17d3   :  { %v1081_v28 = vmin.f32 %v1079_v26, %v1080_v27 }
0x17d5   :  { %v1614_v29 = vtrunc.f32 %v1081_v28 }
0x17d7   :  { %v1615_v30 = vcvt.f32.s32 %v1614_v29 }
0x17d9   :  { %1083 = vst.msk [vmem:[#allocation5 + $0x1] sm:$0x1] %vm1053_vm15, %v1615_v30 }
0x1851   :  { %v1087_v31 = vpop.xlane.xlu1 %1086 }
0x1852   :  { %v1088_v33 = vadd.f32 %v1087_v31, %v1931_v53 }
0x1854   :  { %v1094_v36 = vadd.f32 %v1440_v35, %v1088_v33 }
0x1856   :  { %v1095_v37 = vsel %vm1035_vm13, %v1094_v36, -inf }
0x1857   :  { %v1096_v38 = vrot.slane %v1095_v37, 4 }
0x1859   :  { %v1097_v39 = vmax.f32 %v1095_v37, %v1096_v38 }
0x185b   :  { %v1098_v40 = vrot.slane %v1097_v39, 2 }
0x185d   :  { %v1099_v41 = vmax.f32 %v1097_v39, %v1098_v40 }
0x185f   :  { %v1100_v42 = vrot.slane %v1099_v41, 1 }
0x1861   :  { %v1101_v43 = vmax.f32 %v1099_v41, %v1100_v42 }
0x1863   :  { %v1113_v44 = vsel %vm1936_vm14, %v1101_v43, -1e+30  ;;  %vm1102_vm1 = vcmp.ge.f32.partialorder %v1094_v36, %v1101_v43 }
0x1864   :  { %v1114_v32 = vsel %vm1035_vm13, %v1113_v44, -inf  ;;  %v1103_v34 = vsel %vm1102_vm1, %v1940_v63, 5.0  ;;  %v1443_v44 = vld [vmem:[#allocation4 + $0x5] ss:$0 sm:$0xff] }
0x1865   :  { %1115 = vmax.xlane.f32.xlu0 %v1114_v32  ;;  %v1104_v45 = vsel %vm1035_vm13, %v1103_v34, inf }
0x1866   :  { %v1105_v46 = vrot.slane %v1104_v45, 4 }
0x1868   :  { %v1106_v47 = vmin.f32 %v1104_v45, %v1105_v46 }
0x186a   :  { %v1107_v48 = vrot.slane %v1106_v47, 2 }
0x186c   :  { %v1108_v49 = vmin.f32 %v1106_v47, %v1107_v48 }
0x186e   :  { %v1109_v50 = vrot.slane %v1108_v49, 1 }
0x1870   :  { %v1110_v51 = vmin.f32 %v1108_v49, %v1109_v50 }
0x1872   :  { %v1616_v52 = vtrunc.f32 %v1110_v51 }
0x1874   :  { %v1617_v1 = vcvt.f32.s32 %v1616_v52 }
0x1876   :  { %1112 = vst.msk [vmem:[#allocation5 + $0x2] sm:$0x1] %vm1053_vm15, %v1617_v1 }
0x18ee   :  { %v1116_v54 = vpop.xlane.xlu0 %1115 }
0x18ef   :  { %v1117_v55 = vadd.f32 %v1116_v54, %v1931_v53 }
0x18f1   :  { %v1123_v57 = vadd.f32 %v1441_v56, %v1117_v55 }
0x18f3   :  { %v1124_v58 = vsel %vm1035_vm13, %v1123_v57, -inf }
0x18f4   :  { %v1125_v59 = vrot.slane %v1124_v58, 4 }
0x18f6   :  { %v1126_v60 = vmax.f32 %v1124_v58, %v1125_v59 }
0x18f8   :  { %v1127_v16 = vrot.slane %v1126_v60, 2 }
0x18fa   :  { %v1128_v10 = vmax.f32 %v1126_v60, %v1127_v16 }
0x18fc   :  { %v1129_v61 = vrot.slane %v1128_v10, 1 }
0x18fe   :  { %v1130_v62 = vmax.f32 %v1128_v10, %v1129_v61 }
0x1900   :  { %v1142_v13 = vsel %vm1936_vm14, %v1130_v62, -1e+30  ;;  %vm1131_vm2 = vcmp.ge.f32.partialorder %v1123_v57, %v1130_v62 }
0x1901   :  { %v1143_v0 = vsel %vm1035_vm13, %v1142_v13, -inf  ;;  %v1132_v2 = vsel %vm1131_vm2, %v1940_v63, 5.0  ;;  %v1444_v13 = vld [vmem:[#allocation4 + $0x6] ss:$0 sm:$0xff]  ;;  %vm1356_vm2 = vcmp.eq.s32.totalorder %v1779_v17, 3 }
0x1902   :  { %1144 = vmax.xlane.f32.xlu0 %v1143_v0  ;;  %v1133_v14 = vsel %vm1035_vm13, %v1132_v2, inf }
0x1903   :  { %v1134_v3 = vrot.slane %v1133_v14, 4 }
0x1905   :  { %v1135_v4 = vmin.f32 %v1133_v14, %v1134_v3 }
0x1907   :  { %v1136_v5 = vrot.slane %v1135_v4, 2 }
0x1909   :  { %v1137_v6 = vmin.f32 %v1135_v4, %v1136_v5 }
0x190b   :  { %v1138_v7 = vrot.slane %v1137_v6, 1 }
0x190d   :  { %v1139_v8 = vmin.f32 %v1137_v6, %v1138_v7 }
0x190f   :  { %v1618_v9 = vtrunc.f32 %v1139_v8 }
0x1911   :  { %v1619_v11 = vcvt.f32.s32 %v1618_v9 }
0x1913   :  { %1141 = vst.msk [vmem:[#allocation5 + $0x3] sm:$0x1] %vm1053_vm15, %v1619_v11 }
0x198b   :  { %v1145_v15 = vpop.xlane.xlu0 %1144 }
0x198c   :  { %v1146_v18 = vadd.f32 %v1145_v15, %v1931_v53 }
0x198e   :  { %v1152_v20 = vadd.f32 %v1442_v19, %v1146_v18 }
0x1990   :  { %v1153_v21 = vsel %vm1035_vm13, %v1152_v20, -inf }
0x1991   :  { %v1154_v22 = vrot.slane %v1153_v21, 4 }
0x1993   :  { %v1155_v23 = vmax.f32 %v1153_v21, %v1154_v22 }
0x1995   :  { %v1156_v24 = vrot.slane %v1155_v23, 2 }
0x1997   :  { %v1157_v25 = vmax.f32 %v1155_v23, %v1156_v24 }
0x1999   :  { %v1158_v26 = vrot.slane %v1157_v25, 1 }
0x199b   :  { %v1159_v27 = vmax.f32 %v1157_v25, %v1158_v26 }
0x199d   :  { %v1171_v28 = vsel %vm1936_vm14, %v1159_v27, -1e+30  ;;  %vm1160_vm3 = vcmp.ge.f32.partialorder %v1152_v20, %v1159_v27 }
0x199e   :  { %v1172_v29 = vsel %vm1035_vm13, %v1171_v28, -inf  ;;  %v1161_v30 = vsel %vm1160_vm3, %v1940_v63, 5.0  ;;  %v1445_v28 = vld [vmem:[#allocation4 + $0x7] ss:$0 sm:$0xff] }
0x199f   :  { %1173 = vmax.xlane.f32.xlu1 %v1172_v29  ;;  %v1162_v31 = vsel %vm1035_vm13, %v1161_v30, inf }
0x19a0   :  { %v1163_v33 = vrot.slane %v1162_v31, 4 }
0x19a2   :  { %v1164_v35 = vmin.f32 %v1162_v31, %v1163_v33 }
0x19a4   :  { %v1165_v36 = vrot.slane %v1164_v35, 2 }
0x19a6   :  { %v1166_v37 = vmin.f32 %v1164_v35, %v1165_v36 }
0x19a8   :  { %v1167_v38 = vrot.slane %v1166_v37, 1 }
0x19aa   :  { %v1168_v39 = vmin.f32 %v1166_v37, %v1167_v38 }
0x19ac   :  { %v1620_v40 = vtrunc.f32 %v1168_v39 }
0x19ae   :  { %v1621_v41 = vcvt.f32.s32 %v1620_v40 }
0x19b0   :  { %1170 = vst.msk [vmem:[#allocation5 + $0x4] sm:$0x1] %vm1053_vm15, %v1621_v41 }
0x1a28   :  { %v1174_v42 = vpop.xlane.xlu1 %1173 }
0x1a29   :  { %v1175_v43 = vadd.f32 %v1174_v42, %v1931_v53 }
0x1a2b   :  { %v1181_v32 = vadd.f32 %v1443_v44, %v1175_v43 }
0x1a2d   :  { %v1182_v34 = vsel %vm1035_vm13, %v1181_v32, -inf }
0x1a2e   :  { %v1183_v45 = vrot.slane %v1182_v34, 4 }
0x1a30   :  { %v1184_v46 = vmax.f32 %v1182_v34, %v1183_v45 }
0x1a32   :  { %v1185_v47 = vrot.slane %v1184_v46, 2 }
0x1a34   :  { %v1186_v48 = vmax.f32 %v1184_v46, %v1185_v47 }
0x1a36   :  { %v1187_v49 = vrot.slane %v1186_v48, 1 }
0x1a38   :  { %v1188_v50 = vmax.f32 %v1186_v48, %v1187_v49 }
0x1a3a   :  { %v1200_v51 = vsel %vm1936_vm14, %v1188_v50, -1e+30  ;;  %vm1189_vm4 = vcmp.ge.f32.partialorder %v1181_v32, %v1188_v50 }
0x1a3b   :  { %v1201_v52 = vsel %vm1035_vm13, %v1200_v51, -inf  ;;  %v1190_v1 = vsel %vm1189_vm4, %v1940_v63, 5.0  ;;  %vm1374_vm4 = vcmp.eq.s32.totalorder %v1779_v17, 2 }
0x1a3c   :  { %1202 = vmax.xlane.f32.xlu0 %v1201_v52  ;;  %v1191_v54 = vsel %vm1035_vm13, %v1190_v1, inf }
0x1a3d   :  { %v1192_v55 = vrot.slane %v1191_v54, 4 }
0x1a3f   :  { %v1193_v56 = vmin.f32 %v1191_v54, %v1192_v55 }
0x1a41   :  { %v1194_v57 = vrot.slane %v1193_v56, 2 }
0x1a43   :  { %v1195_v58 = vmin.f32 %v1193_v56, %v1194_v57 }
0x1a45   :  { %v1196_v59 = vrot.slane %v1195_v58, 1 }
0x1a47   :  { %v1197_v60 = vmin.f32 %v1195_v58, %v1196_v59 }
0x1a49   :  { %v1622_v16 = vtrunc.f32 %v1197_v60 }
0x1a4b   :  { %v1623_v10 = vcvt.f32.s32 %v1622_v16 }
0x1a4d   :  { %1199 = vst.msk [vmem:[#allocation5 + $0x5] sm:$0x1] %vm1053_vm15, %v1623_v10 }
0x1ac5   :  { %v1203_v61 = vpop.xlane.xlu0 %1202 }
0x1ac6   :  { %v1204_v62 = vadd.f32 %v1203_v61, %v1931_v53 }
0x1ac8   :  { %v1210_v0 = vadd.f32 %v1444_v13, %v1204_v62 }
0x1aca   :  { %v1211_v2 = vsel %vm1035_vm13, %v1210_v0, -inf }
0x1acb   :  { %v1212_v14 = vrot.slane %v1211_v2, 4 }
0x1acd   :  { %v1213_v3 = vmax.f32 %v1211_v2, %v1212_v14 }
0x1acf   :  { %v1214_v4 = vrot.slane %v1213_v3, 2 }
0x1ad1   :  { %v1215_v5 = vmax.f32 %v1213_v3, %v1214_v4 }
0x1ad3   :  { %v1216_v6 = vrot.slane %v1215_v5, 1 }
0x1ad5   :  { %v1217_v7 = vmax.f32 %v1215_v5, %v1216_v6 }
0x1ad7   :  { %v1229_v8 = vsel %vm1936_vm14, %v1217_v7, -1e+30  ;;  %vm1218_vm5 = vcmp.ge.f32.partialorder %v1210_v0, %v1217_v7 }
0x1ad8   :  { %v1230_v9 = vsel %vm1035_vm13, %v1229_v8, -inf  ;;  %v1219_v11 = vsel %vm1218_vm5, %v1940_v63, 5.0 }
0x1ad9   :  { %1231 = vmax.xlane.f32.xlu1 %v1230_v9  ;;  %v1220_v15 = vsel %vm1035_vm13, %v1219_v11, inf }
0x1ada   :  { %v1221_v18 = vrot.slane %v1220_v15, 4 }
0x1adc   :  { %v1222_v19 = vmin.f32 %v1220_v15, %v1221_v18 }
0x1ade   :  { %v1223_v20 = vrot.slane %v1222_v19, 2 }
0x1ae0   :  { %v1224_v21 = vmin.f32 %v1222_v19, %v1223_v20 }
0x1ae2   :  { %v1225_v22 = vrot.slane %v1224_v21, 1 }
0x1ae4   :  { %v1226_v23 = vmin.f32 %v1224_v21, %v1225_v22 }
0x1ae6   :  { %v1624_v24 = vtrunc.f32 %v1226_v23 }
0x1ae8   :  { %v1625_v25 = vcvt.f32.s32 %v1624_v24 }
0x1aea   :  { %1228 = vst.msk [vmem:[#allocation5 + $0x6] sm:$0x1] %vm1053_vm15, %v1625_v25 }
0x1af1   :  { %v1304_v20 = vld [vmem:[#allocation5 + $0x6] sm:$0x1] }
0x1b62   :  { %v1232_v26 = vpop.xlane.xlu1 %1231 }
0x1b63   :  { %v1233_v27 = vadd.f32 %v1232_v26, %v1931_v53 }
0x1b65   :  { %v1239_v29 = vadd.f32 %v1445_v28, %v1233_v27 }
0x1b67   :  { %v1240_v30 = vsel %vm1035_vm13, %v1239_v29, -inf }
0x1b68   :  { %v1241_v31 = vrot.slane %v1240_v30, 4 }
0x1b6a   :  { %v1242_v33 = vmax.f32 %v1240_v30, %v1241_v31 }
0x1b6c   :  { %v1243_v35 = vrot.slane %v1242_v33, 2 }
0x1b6e   :  { %v1244_v36 = vmax.f32 %v1242_v33, %v1243_v35 }
0x1b70   :  { %v1245_v37 = vrot.slane %v1244_v36, 1 }
0x1b72   :  { %v1246_v38 = vmax.f32 %v1244_v36, %v1245_v37 }
0x1b74   :  { %v1258_v39 = vsel %vm1936_vm14, %v1246_v38, -1e+30  ;;  %vm1247_vm6 = vcmp.ge.f32.partialorder %v1239_v29, %v1246_v38  ;;  %v1322_v38 = vld [vmem:[#allocation5 + $0x5] sm:$0x1] }
0x1b75   :  { %v1259_v40 = vsel %vm1035_vm13, %v1258_v39, -inf  ;;  %v1248_v41 = vsel %vm1247_vm6, %v1940_v63, 5.0  ;;  %vm1392_vm6 = vcmp.eq.s32.totalorder %v1779_v17, 1 }
0x1b76   :  { %1260 = vmax.xlane.f32.xlu0 %v1259_v40  ;;  %v1249_v42 = vsel %vm1035_vm13, %v1248_v41, inf  ;;  %vm1320_vm13 = vcmp.eq.s32.totalorder %v1779_v17, 5 }
0x1b77   :  { %v1250_v43 = vrot.slane %v1249_v42, 4 }
0x1b79   :  { %v1251_v44 = vmin.f32 %v1249_v42, %v1250_v43 }
0x1b7b   :  { %v1252_v32 = vrot.slane %v1251_v44, 2 }
0x1b7d   :  { %v1253_v34 = vmin.f32 %v1251_v44, %v1252_v32 }
0x1b7f   :  { %v1254_v45 = vrot.slane %v1253_v34, 1 }
0x1b81   :  { %v1255_v46 = vmin.f32 %v1253_v34, %v1254_v45 }
0x1b83   :  { %v1626_v47 = vtrunc.f32 %v1255_v46 }
0x1b85   :  { %v1627_v48 = vcvt.f32.s32 %v1626_v47 }
0x1b87   :  { %1257 = vst.msk [vmem:[#allocation5 + $0x7] sm:$0x1] %vm1053_vm15, %v1627_v48 }
0x1b8e   :  { %v1286_v14 = vld [vmem:[#allocation5 + $0x7] sm:$0x1] }
0x1bff   :  { %v1261_v49 = vpop.xlane.xlu0 %1260 }
0x1c00   :  { %v1262_v50 = vadd.f32 %v1261_v49, %v1931_v53  ;;  %v1340_v49 = vld [vmem:[#allocation5 + $0x4] sm:$0x1] }
0x1c02   :  { %v1264_v51 = vsel %vm1263_vm7, %v1262_v50, -inf }
0x1c03   :  { %v1265_v52 = vrot.slane %v1264_v51, 4 }
0x1c05   :  { %v1266_v1 = vmax.f32 %v1264_v51, %v1265_v52 }
0x1c07   :  { %v1267_v54 = vrot.slane %v1266_v1, 2 }
0x1c09   :  { %v1268_v55 = vmax.f32 %v1266_v1, %v1267_v54 }
0x1c0b   :  { %v1269_v56 = vrot.slane %v1268_v55, 1 }
0x1c0d   :  { %v1270_v57 = vmax.f32 %v1268_v55, %v1269_v56 }
0x1c0f   :  { %vm1271_vm8 = vcmp.ge.f32.partialorder %v1262_v50, %v1270_v57 }
0x1c10   :  { %v1272_v58 = vsel %vm1271_vm8, %v1940_v63, 5.0  ;;  %vm1410_vm8 = vcmp.eq.s32.totalorder %v1779_v17, 0 }
0x1c11   :  { %v1273_v59 = vsel %vm1263_vm7, %v1272_v58, inf }
0x1c12   :  { %v1274_v60 = vrot.slane %v1273_v59, 4 }
0x1c14   :  { %v1275_v16 = vmin.f32 %v1273_v59, %v1274_v60 }
0x1c16   :  { %v1276_v10 = vrot.slane %v1275_v16, 2 }
0x1c18   :  { %v1277_v61 = vmin.f32 %v1275_v16, %v1276_v10 }
0x1c1a   :  { %v1278_v62 = vrot.slane %v1277_v61, 1 }
0x1c1c   :  { %v1279_v13 = vmin.f32 %v1277_v61, %v1278_v62  ;;  %v1358_v61 = vld [vmem:[#allocation5 + $0x3] sm:$0x1] }
0x1c1e   :  { %v1628_v0 = vtrunc.f32 %v1279_v13 }
0x1c20   :  { %v1629_v2 = vcvt.f32.s32 %v1628_v0 }
0x1c22   :  { %1283 = vperm.xlu1 %1645, %v1629_v2  }
0x1c9d   :  { %v1284_v53 = vpop.permute.xlu1 %1283 }
0x1c9e   :  { %vm1287_vm9 = vcmp.eq.s32.totalorder %v1779_v17, %v1284_v53  ;;  %v1285_v33 = vsel %vm1281_vm11, %v1284_v53, 0 }
0x1c9f   :  { %v1288_v3 = vsel %vm1287_vm9, %v1286_v14, 0  ;;  %vm1414_vm9 = vcmask 57344  }
0x1ca0   :  { %v1289_v4 = vsel %vm1053_vm15, %v1288_v3, 0 }
0x1ca1   :  { %v1291_v5 = vshrl.u32 %v1289_v4, 16  ;;  %v1290_v63 = vand.u32 65535, %v1289_v4 }
0x1ca3   :  { %v1293_v6 = vcvt.s32.f32 %v1291_v5  ;;  %v1292_v7 = vcvt.s32.f32 %v1290_v63 }
0x1ca5   :  { %1296 = vadd.xlane.f32.xlu0 %v1293_v6 }
0x1ca9   :  { %1294 = vadd.xlane.f32.xlu0 %v1292_v7 }
0x1d2e   :  { %v1297_v8 = vpop.xlane.xlu0 %1296 }
0x1d2f   :  { %v1299_v9 = vcvt.f32.s32 %v1297_v8 }
0x1d31   :  { %v1300_v15 = vshll.u32 %v1299_v9, 16  ;;  %v1376_v9 = vld [vmem:[#allocation5 + $0x2] sm:$0x1] }
0x1d32   :  { %v1295_v11 = vpop.xlane.xlu0 %1294 }
0x1d33   :  { %v1298_v18 = vcvt.f32.s32 %v1295_v11 }
0x1d35   :  { %v1301_v19 = vadd.s32 %v1300_v15, %v1298_v18 }
0x1d37   :  { %vm1305_vm10 = vcmp.eq.s32.totalorder %v1779_v17, %v1301_v19  ;;  %v1303_v36 = vsel %vm1302_vm12, %v1301_v19, %v1285_v33 }
0x1d38   :  { %v1306_v21 = vsel %vm1305_vm10, %v1304_v20, 0  ;;  %vm1420_vm10 = vcmask 65600  }
0x1d39   :  { %v1307_v22 = vsel %vm1053_vm15, %v1306_v21, 0 }
0x1d3a   :  { %v1309_v23 = vshrl.u32 %v1307_v22, 16  ;;  %v1308_v25 = vand.u32 65535, %v1307_v22 }
0x1d3c   :  { %v1311_v24 = vcvt.s32.f32 %v1309_v23  ;;  %v1310_v26 = vcvt.s32.f32 %v1308_v25 }
0x1d3e   :  { %1314 = vadd.xlane.f32.xlu0 %v1311_v24 }
0x1d42   :  { %1312 = vadd.xlane.f32.xlu0 %v1310_v26 }
0x1dc7   :  { %v1315_v27 = vpop.xlane.xlu0 %1314 }
0x1dc8   :  { %v1317_v28 = vcvt.f32.s32 %v1315_v27 }
0x1dca   :  { %v1318_v30 = vshll.u32 %v1317_v28, 16 }
0x1dcb   :  { %v1313_v29 = vpop.xlane.xlu0 %1312 }
0x1dcc   :  { %v1316_v31 = vcvt.f32.s32 %v1313_v29  ;;  %v1394_v29 = vld [vmem:[#allocation5 + $0x1] sm:$0x1] }
0x1dce   :  { %v1319_v35 = vadd.s32 %v1318_v30, %v1316_v31 }
0x1dd0   :  { %v1321_v37 = vsel %vm1320_vm13, %v1319_v35, %v1303_v36  ;;  %vm1323_vm14 = vcmp.eq.s32.totalorder %v1779_v17, %v1319_v35 }
0x1dd1   :  { %v1324_v39 = vsel %vm1323_vm14, %v1322_v38, 0 }
0x1dd2   :  { %v1325_v40 = vsel %vm1053_vm15, %v1324_v39, 0 }
0x1dd3   :  { %v1327_v41 = vshrl.u32 %v1325_v40, 16  ;;  %v1326_v42 = vand.u32 65535, %v1325_v40 }
0x1dd5   :  { %v1329_v43 = vcvt.s32.f32 %v1327_v41  ;;  %v1328_v44 = vcvt.s32.f32 %v1326_v42 }
0x1dd7   :  { %1332 = vadd.xlane.f32.xlu1 %v1329_v43  ;;  %1330 = vadd.xlane.f32.xlu0 %v1328_v44 }
0x1de8   :  { %1417 = vrot.lane.b32.xlu1 %v1270_v57, %s1713_s20 }
0x1e60   :  { %v1333_v32 = vpop.xlane.xlu1 %1332  ;;  %v1331_v34 = vpop.xlane.xlu0 %1330 }
0x1e61   :  { %v1335_v45 = vcvt.f32.s32 %v1333_v32  ;;  %v1334_v47 = vcvt.f32.s32 %v1331_v34 }
0x1e63   :  { %v1336_v46 = vshll.u32 %v1335_v45, 16 }
0x1e64   :  { %v1418_v34 = vpop.permute.xlu1 %1417 }
0x1e65   :  { %v1337_v48 = vadd.s32 %v1336_v46, %v1334_v47 }
0x1e67   :  { %v1339_v12 = vsel %vm1338_vm0, %v1337_v48, %v1321_v37  ;;  %vm1341_vm1 = vcmp.eq.s32.totalorder %v1779_v17, %v1337_v48 }
0x1e68   :  { %v1342_v50 = vsel %vm1341_vm1, %v1340_v49, 0 }
0x1e69   :  { %v1343_v51 = vsel %vm1053_vm15, %v1342_v50, 0 }
0x1e6a   :  { %v1345_v52 = vshrl.u32 %v1343_v51, 16  ;;  %v1344_v54 = vand.u32 65535, %v1343_v51 }
0x1e6c   :  { %v1347_v1 = vcvt.s32.f32 %v1345_v52  ;;  %v1346_v55 = vcvt.s32.f32 %v1344_v54 }
0x1e6e   :  { %1350 = vadd.xlane.f32.xlu0 %v1347_v1 }
0x1e72   :  { %1348 = vadd.xlane.f32.xlu0 %v1346_v55 }
0x1ef7   :  { %v1351_v56 = vpop.xlane.xlu0 %1350 }
0x1ef8   :  { %v1353_v57 = vcvt.f32.s32 %v1351_v56 }
0x1efa   :  { %v1354_v59 = vshll.u32 %v1353_v57, 16 }
0x1efb   :  { %v1349_v58 = vpop.xlane.xlu0 %1348 }
0x1efc   :  { %v1352_v60 = vcvt.f32.s32 %v1349_v58 }
0x1efe   :  { %v1355_v16 = vadd.s32 %v1354_v59, %v1352_v60 }
0x1f00   :  { %v1357_v10 = vsel %vm1356_vm2, %v1355_v16, %v1339_v12  ;;  %vm1359_vm3 = vcmp.eq.s32.totalorder %v1779_v17, %v1355_v16 }
0x1f01   :  { %v1360_v62 = vsel %vm1359_vm3, %v1358_v61, 0 }
0x1f02   :  { %v1361_v13 = vsel %vm1053_vm15, %v1360_v62, 0 }
0x1f03   :  { %v1363_v0 = vshrl.u32 %v1361_v13, 16  ;;  %v1362_v53 = vand.u32 65535, %v1361_v13 }
0x1f05   :  { %v1365_v2 = vcvt.s32.f32 %v1363_v0  ;;  %v1364_v14 = vcvt.s32.f32 %v1362_v53 }
0x1f07   :  { %1368 = vadd.xlane.f32.xlu0 %v1365_v2 }
0x1f0b   :  { %1366 = vadd.xlane.f32.xlu0 %v1364_v14 }
0x1f90   :  { %v1369_v3 = vpop.xlane.xlu0 %1368 }
0x1f91   :  { %v1371_v4 = vcvt.f32.s32 %v1369_v3 }
0x1f93   :  { %v1372_v6 = vshll.u32 %v1371_v4, 16 }
0x1f94   :  { %v1367_v5 = vpop.xlane.xlu0 %1366 }
0x1f95   :  { %v1370_v63 = vcvt.f32.s32 %v1367_v5 }
0x1f97   :  { %v1373_v7 = vadd.s32 %v1372_v6, %v1370_v63 }
0x1f99   :  { %v1375_v8 = vsel %vm1374_vm4, %v1373_v7, %v1357_v10  ;;  %vm1377_vm5 = vcmp.eq.s32.totalorder %v1779_v17, %v1373_v7 }
0x1f9a   :  { %v1378_v11 = vsel %vm1377_vm5, %v1376_v9, 0 }
0x1f9b   :  { %v1379_v15 = vsel %vm1053_vm15, %v1378_v11, 0 }
0x1f9c   :  { %v1381_v18 = vshrl.u32 %v1379_v15, 16  ;;  %v1380_v20 = vand.u32 65535, %v1379_v15 }
0x1f9e   :  { %v1383_v19 = vcvt.s32.f32 %v1381_v18  ;;  %v1382_v21 = vcvt.s32.f32 %v1380_v20 }
0x1fa0   :  { %1386 = vadd.xlane.f32.xlu0 %v1383_v19 }
0x1fa4   :  { %1384 = vadd.xlane.f32.xlu0 %v1382_v21 }
0x2029   :  { %v1387_v22 = vpop.xlane.xlu0 %1386 }
0x202a   :  { %v1389_v23 = vcvt.f32.s32 %v1387_v22 }
0x202c   :  { %v1390_v25 = vshll.u32 %v1389_v23, 16 }
0x202d   :  { %v1385_v24 = vpop.xlane.xlu0 %1384 }
0x202e   :  { %v1388_v26 = vcvt.f32.s32 %v1385_v24 }
0x2030   :  { %v1391_v27 = vadd.s32 %v1390_v25, %v1388_v26 }
0x2032   :  { %v1393_v28 = vsel %vm1392_vm6, %v1391_v27, %v1375_v8  ;;  %vm1395_vm7 = vcmp.eq.s32.totalorder %v1779_v17, %v1391_v27 }
0x2033   :  { %v1396_v30 = vsel %vm1395_vm7, %v1394_v29, 0 }
0x2034   :  { %v1397_v31 = vsel %vm1053_vm15, %v1396_v30, 0 }
0x2035   :  { %v1399_v33 = vshrl.u32 %v1397_v31, 16  ;;  %v1398_v36 = vand.u32 65535, %v1397_v31 }
0x2037   :  { %v1401_v35 = vcvt.s32.f32 %v1399_v33  ;;  %v1400_v37 = vcvt.s32.f32 %v1398_v36 }
0x2039   :  { %1404 = vadd.xlane.f32.xlu0 %v1401_v35 }
0x203d   :  { %1402 = vadd.xlane.f32.xlu0 %v1400_v37 }
0x20c2   :  { %v1405_v38 = vpop.xlane.xlu0 %1404 }
0x20c3   :  { %v1407_v39 = vcvt.f32.s32 %v1405_v38 }
0x20c5   :  { %v1408_v41 = vshll.u32 %v1407_v39, 16 }
0x20c6   :  { %v1403_v40 = vpop.xlane.xlu0 %1402 }
0x20c7   :  { %v1406_v42 = vcvt.f32.s32 %v1403_v40 }
0x20c9   :  { %v1409_v43 = vadd.s32 %v1408_v41, %v1406_v42 }
0x20cb   :  { %v1411_v44 = vsel %vm1410_vm8, %v1409_v43, %v1393_v28 }
0x20cc   :  { %v1413_v32 = vcvt.s32.f32 %v1411_v44 }
0x20ce   :  { %1415 = vst.msk [vmem:[%s2033_s2] sm:$0x1] %vm1414_vm9, %v1413_v32 }
0x20cf   :  { %1421 = vst.msk [vmem:[%s2033_s2] sm:$0x1] %vm1420_vm10, %v1418_v34 }
0x20d0   :  { %1426 = vsyncpa [#allocation7], 1 }

</bundles_post_ra>
